<compile_context>
chip_gen: v7x
topology: tpu7x:2x2x1
jax: 0.10.0
libtpu: 0.0.40
codegen_flags: <defaults>
</compile_context>

<pallas_src>
import numpy as np
import jax
import jax.numpy as jnp
from jax.experimental import pallas as pl
from jax.experimental.pallas import tpu as pltpu


# ----------------------------------------------------------------------------
# Fused kernel: per batch
#   y = [BN(conv1x1(x_rgb)); BN(conv1x1(x_d))]          (2C, HW) one tile
#   y *= sigmoid(shared channel-attention MLP)          (block-diag MLP)
#   attn = sigmoid(BN(conv7x7(ChannelPool(y_d))))       (two banded matmuls)
#   f_rgbd = y_rgb * attn + y_rgb
# ----------------------------------------------------------------------------
def _dwnet_kernel(x_rgb_ref, x_d_ref,
                  wc_rgb_ref, wc_d_ref, bc_ref,
                  w1_ref, b1_ref, w2_ref, b2x2_ref,
                  t_max_ref, t_mean_ref, bsp_ref,
                  o_rgbd_ref, o_attn_ref):
    c_out = o_rgbd_ref.shape[1]

    # Both 1x1 convs (BN folded) into one (2*C_out, HW) tile: rows [0,C) = rgb,
    # rows [C,2C) = d.  Weights carry the block structure (zero off-blocks).
    y = (jnp.dot(wc_rgb_ref[...], x_rgb_ref[0], preferred_element_type=jnp.float32)
         + jnp.dot(wc_d_ref[...], x_d_ref[0], preferred_element_type=jnp.float32)
         + bc_ref[...])                                        # (2C, HW)

    # Shared channel attention, both branches at once via block-diag MLP.
    avg_p = jnp.mean(y, axis=1, keepdims=True)                 # (2C, 1)
    max_p = jnp.max(y, axis=1, keepdims=True)                  # (2C, 1)
    ha = jnp.maximum(
        jnp.dot(w1_ref[...], avg_p, preferred_element_type=jnp.float32) + b1_ref[...], 0.0)
    hm = jnp.maximum(
        jnp.dot(w1_ref[...], max_p, preferred_element_type=jnp.float32) + b1_ref[...], 0.0)
    # mlp(avg) + mlp(max) = w2 @ (ha + hm) + 2*b2   (b2x2 is pre-doubled)
    att = jnp.dot(w2_ref[...], ha + hm, preferred_element_type=jnp.float32) + b2x2_ref[...]
    y = y * jax.nn.sigmoid(att)                                # (2C, HW)

    y_rgb = y[:c_out]                                          # (C, HW)
    y_d = y[c_out:]                                            # (C, HW)

    # Spatial attention from the D branch: ChannelPool (max/mean over C) then
    # the 7x7 conv (pad 3) + BN expressed as banded (HW, HW) matmul weights.
    maxp = jnp.max(y_d, axis=0, keepdims=True)                 # (1, HW)
    meanp = jnp.mean(y_d, axis=0, keepdims=True)               # (1, HW)
    logit = (jnp.dot(maxp, t_max_ref[...], preferred_element_type=jnp.float32)
             + jnp.dot(meanp, t_mean_ref[...], preferred_element_type=jnp.float32)
             + bsp_ref[...])                                   # (1, HW)
    attn = jax.nn.sigmoid(logit)                               # (1, HW)

    o_rgbd_ref[0] = (y_rgb * attn + y_rgb).astype(o_rgbd_ref.dtype)
    o_attn_ref[0] = attn.astype(o_attn_ref.dtype)


# ----------------------------------------------------------------------------
# Wrapper
# ----------------------------------------------------------------------------
def dwnet_forward(f_rgb, f_d, params):
    B, C_rgb, H, W = f_rgb.shape
    C_d = f_d.shape[1]
    C_out = params['w_rgb'].shape[0]
    hidden = params['w1'].shape[0]
    HW = H * W
    eps = 1e-5

    def fold_bn(conv_b, gamma, beta, mean, var):
        s = gamma / jnp.sqrt(var + eps)
        return s, s * (conv_b - mean) + beta

    s_rgb, b_rgb = fold_bn(params['b_rgb'], params['bn_rgb_g'], params['bn_rgb_b'],
                           params['bn_rgb_m'], params['bn_rgb_v'])
    s_d, b_d = fold_bn(params['b_d'], params['bn_d_g'], params['bn_d_b'],
                       params['bn_d_m'], params['bn_d_v'])
    s_sp, b_sp = fold_bn(params['b_sp'], params['bn_sp_g'], params['bn_sp_b'],
                         params['bn_sp_m'], params['bn_sp_v'])

    # BN scale folded into the 1x1 conv weights; both branches stacked into one
    # (2*C_out, .) block so the kernel epilogue runs on a single (2C, HW) tile.
    w_rgb_f = params['w_rgb'] * s_rgb[:, None]
    w_d_f = params['w_d'] * s_d[:, None]
    wc_rgb = jnp.concatenate([w_rgb_f, jnp.zeros((C_out, C_rgb), jnp.float32)], axis=0)
    wc_d = jnp.concatenate([jnp.zeros((C_out, C_d), jnp.float32), w_d_f], axis=0)
    bc = jnp.concatenate([b_rgb, b_d], axis=0)[:, None]                 # (2C, 1)

    # Shared channel-attention MLP duplicated block-diagonally (rgb / d rows).
    w1_bd = jax.scipy.linalg.block_diag(params['w1'], params['w1'])     # (2h, 2C)
    w2_bd = jax.scipy.linalg.block_diag(params['w2'], params['w2'])     # (2C, 2h)
    b1_bd = jnp.concatenate([params['b1'], params['b1']])[:, None]      # (2h, 1)
    b2_bd2 = 2.0 * jnp.concatenate([params['b2'], params['b2']])[:, None]  # mlp(avg)+mlp(max)

    # 7x7 spatial conv (zero pad 3) + BN as banded (HW, HW) matmul weights:
    #   out[k] = sum_{k'} pool[c, k'] * T[c, k', k],
    #   T[c, k', k] = s_sp * w_sp[0, c, i'-i+3, j'-j+3] inside the 7x7 window.
    idx_i = jnp.arange(HW) // W
    idx_j = jnp.arange(HW) % W
    dp = idx_i[:, None] - idx_i[None, :] + 3          # rows: source k', cols: output k
    dq = idx_j[:, None] - idx_j[None, :] + 3
    valid = (dp >= 0) & (dp < 7) & (dq >= 0) & (dq < 7)
    w_sp = params['w_sp'][0]                          # (2, 7, 7): [max-chan, mean-chan]
    taps = w_sp[:, jnp.clip(dp, 0, 6), jnp.clip(dq, 0, 6)]              # (2, HW, HW)
    T = jnp.where(valid[None], taps, 0.0) * s_sp[0]
    t_max, t_mean = T[0], T[1]
    b_sp_f = b_sp.reshape(1, 1)

    x_rgb = f_rgb.reshape(B, C_rgb, HW)
    x_d = f_d.reshape(B, C_d, HW)

    const2 = lambda b: (0, 0)
    kernel = pl.pallas_call(
        _dwnet_kernel,
        out_shape=(jax.ShapeDtypeStruct((B, C_out, HW), jnp.float32),
                   jax.ShapeDtypeStruct((B, 1, HW), jnp.float32)),
        grid_spec=pltpu.PrefetchScalarGridSpec(
            num_scalar_prefetch=0,
            grid=(B,),
            in_specs=[
                pl.BlockSpec((1, C_rgb, HW), lambda b: (b, 0, 0)),      # x_rgb
                pl.BlockSpec((1, C_d, HW), lambda b: (b, 0, 0)),        # x_d
                pl.BlockSpec((2 * C_out, C_rgb), const2),               # wc_rgb
                pl.BlockSpec((2 * C_out, C_d), const2),                 # wc_d
                pl.BlockSpec((2 * C_out, 1), const2),                   # bc
                pl.BlockSpec((2 * hidden, 2 * C_out), const2),          # w1 (block-diag)
                pl.BlockSpec((2 * hidden, 1), const2),                  # b1
                pl.BlockSpec((2 * C_out, 2 * hidden), const2),          # w2 (block-diag)
                pl.BlockSpec((2 * C_out, 1), const2),                   # 2*b2
                pl.BlockSpec((HW, HW), const2),                         # T (max channel)
                pl.BlockSpec((HW, HW), const2),                         # T (mean channel)
                pl.BlockSpec((1, 1), const2),                           # folded spatial bias
            ],
            out_specs=[
                pl.BlockSpec((1, C_out, HW), lambda b: (b, 0, 0)),
                pl.BlockSpec((1, 1, HW), lambda b: (b, 0, 0)),
            ],
        ),
        compiler_params=pltpu.CompilerParams(dimension_semantics=("parallel",)),
    )
    o_rgbd, o_attn = kernel(x_rgb, x_d, wc_rgb, wc_d, bc,
                            w1_bd, b1_bd, w2_bd, b2_bd2,
                            t_max, t_mean, b_sp_f)
    return o_rgbd.reshape(B, C_out, H, W), o_attn.reshape(B, 1, H, W)


# ----------------------------------------------------------------------------
# Deterministic parameter init (kaiming fan_in for weights, zero biases,
# PyTorch-default BatchNorm buffers).
# ----------------------------------------------------------------------------
def init_params(key, rgb_dims, d_dims, output_dims):
    hidden = output_dims // (output_dims // 4)
    ks = jax.random.split(key, 5)

    def kaiming(k, shape, fan_in):
        return jax.random.normal(k, shape, jnp.float32) * np.sqrt(2.0 / fan_in)

    p = {
        'w_rgb': kaiming(ks[0], (output_dims, rgb_dims), rgb_dims),
        'b_rgb': jnp.zeros((output_dims,), jnp.float32),
        'w_d': kaiming(ks[1], (output_dims, d_dims), d_dims),
        'b_d': jnp.zeros((output_dims,), jnp.float32),
        'w1': kaiming(ks[2], (hidden, output_dims), output_dims),
        'b1': jnp.zeros((hidden,), jnp.float32),
        'w2': kaiming(ks[3], (output_dims, hidden), hidden),
        'b2': jnp.zeros((output_dims,), jnp.float32),
        'w_sp': kaiming(ks[4], (1, 2, 7, 7), 2 * 7 * 7),
        'b_sp': jnp.zeros((1,), jnp.float32),
    }
    for name, c in (('rgb', output_dims), ('d', output_dims), ('sp', 1)):
        p[f'bn_{name}_g'] = jnp.ones((c,), jnp.float32)
        p[f'bn_{name}_b'] = jnp.zeros((c,), jnp.float32)
        p[f'bn_{name}_m'] = jnp.zeros((c,), jnp.float32)
        p[f'bn_{name}_v'] = jnp.ones((c,), jnp.float32)
    return p


# ----------------------------------------------------------------------------
# Pure-JAX reference (for correctness check)
# ----------------------------------------------------------------------------
def dwnet_reference(f_rgb, f_d, P):
    eps = 1e-5

    def bn(y, g, be, m, v):
        return (y - m[None, :, None, None]) / jnp.sqrt(v[None, :, None, None] + eps) \
            * g[None, :, None, None] + be[None, :, None, None]

    def conv1x1_bn(x, w, b, tag):
        y = jnp.einsum('oc,bchw->bohw', w, x) + b[None, :, None, None]
        return bn(y, P[f'bn_{tag}_g'], P[f'bn_{tag}_b'], P[f'bn_{tag}_m'], P[f'bn_{tag}_v'])

    def chattn(x):
        avg = x.mean(axis=(2, 3))
        mx = x.max(axis=(2, 3))

        def mlp(p):
            h = jnp.maximum(p @ P['w1'].T + P['b1'], 0.0)
            return h @ P['w2'].T + P['b2']

        att = mlp(avg) + mlp(mx)
        return x * jax.nn.sigmoid(att)[:, :, None, None]

    frgb = chattn(conv1x1_bn(f_rgb, P['w_rgb'], P['b_rgb'], 'rgb'))
    fd = chattn(conv1x1_bn(f_d, P['w_d'], P['b_d'], 'd'))
    comp = jnp.concatenate([fd.max(axis=1, keepdims=True),
                            fd.mean(axis=1, keepdims=True)], axis=1)
    y = jax.lax.conv_general_dilated(
        comp, P['w_sp'], window_strides=(1, 1), padding=((3, 3), (3, 3)),
        dimension_numbers=('NCHW', 'OIHW', 'NCHW')) + P['b_sp'][None, :, None, None]
    y = bn(y, P['bn_sp_g'], P['bn_sp_b'], P['bn_sp_m'], P['bn_sp_v'])
    attn = jax.nn.sigmoid(y)
    return frgb * attn + frgb, attn


if __name__ == "__main__":
    B, rgb_dims, d_dims, output_dims, H, W = 2, 64, 32, 32, 16, 16
    key = jax.random.PRNGKey(0)
    k_param, k_rgb, k_d = jax.random.split(key, 3)

    params = init_params(k_param, rgb_dims, d_dims, output_dims)
    f_rgb = jax.random.normal(k_rgb, (B, rgb_dims, H, W), jnp.float32)
    f_d = jax.random.normal(k_d, (B, d_dims, H, W), jnp.float32)

    f_rgbd, attn_d = jax.jit(dwnet_forward)(f_rgb, f_d, params)
    jax.block_until_ready((f_rgbd, attn_d))

    assert f_rgbd.shape == (B, output_dims, H, W)
    assert attn_d.shape == (B, 1, H, W)

    ref_rgbd, ref_attn = dwnet_reference(f_rgb, f_d, params)
    np.testing.assert_allclose(np.asarray(attn_d), np.asarray(ref_attn),
                               atol=2e-3, rtol=2e-3)
    np.testing.assert_allclose(np.asarray(f_rgbd), np.asarray(ref_rgbd),
                               atol=2e-3, rtol=2e-3)
    print("KERNEL_OK")
</pallas_src>

<mosaic_0001>
module attributes {stable_mosaic.version = 11 : i64} {
  func.func @_dwnet_kernel(%arg0: i32, %arg1: memref<1x64x256xf32, #tpu.memory_space<vmem>>, %arg2: memref<1x32x256xf32, #tpu.memory_space<vmem>>, %arg3: memref<64x64xf32, #tpu.memory_space<vmem>>, %arg4: memref<64x32xf32, #tpu.memory_space<vmem>>, %arg5: memref<64x1xf32, #tpu.memory_space<vmem>>, %arg6: memref<8x64xf32, #tpu.memory_space<vmem>>, %arg7: memref<8x1xf32, #tpu.memory_space<vmem>>, %arg8: memref<64x8xf32, #tpu.memory_space<vmem>>, %arg9: memref<64x1xf32, #tpu.memory_space<vmem>>, %arg10: memref<256x256xf32, #tpu.memory_space<vmem>>, %arg11: memref<256x256xf32, #tpu.memory_space<vmem>>, %arg12: memref<1x1xf32, #tpu.memory_space<vmem>>, %arg13: memref<1x32x256xf32, #tpu.memory_space<vmem>>, %arg14: memref<1x1x256xf32, #tpu.memory_space<vmem>>) attributes {dimension_semantics = [#tpu.dimension_semantics<parallel>], iteration_bounds = array<i64: 2>, scalar_prefetch = 0 : i64, scratch_operands = 0 : i64, tpu.core_type = #tpu.core_type<tc>, window_params = [{transform_indices = @transform_0, window_bounds = array<i64: 1, 64, 256>}, {transform_indices = @transform_1, window_bounds = array<i64: 1, 32, 256>}, {pipeline_mode = #tpu.pipeline_mode<synchronous>, transform_indices = @transform_2, window_bounds = array<i64: 64, 64>}, {pipeline_mode = #tpu.pipeline_mode<synchronous>, transform_indices = @transform_3, window_bounds = array<i64: 64, 32>}, {pipeline_mode = #tpu.pipeline_mode<synchronous>, transform_indices = @transform_4, window_bounds = array<i64: 64, 1>}, {pipeline_mode = #tpu.pipeline_mode<synchronous>, transform_indices = @transform_5, window_bounds = array<i64: 8, 64>}, {pipeline_mode = #tpu.pipeline_mode<synchronous>, transform_indices = @transform_6, window_bounds = array<i64: 8, 1>}, {pipeline_mode = #tpu.pipeline_mode<synchronous>, transform_indices = @transform_7, window_bounds = array<i64: 64, 8>}, {pipeline_mode = #tpu.pipeline_mode<synchronous>, transform_indices = @transform_8, window_bounds = array<i64: 64, 1>}, {pipeline_mode = #tpu.pipeline_mode<synchronous>, transform_indices = @transform_9, window_bounds = array<i64: 256, 256>}, {pipeline_mode = #tpu.pipeline_mode<synchronous>, transform_indices = @transform_10, window_bounds = array<i64: 256, 256>}, {pipeline_mode = #tpu.pipeline_mode<synchronous>, transform_indices = @transform_11, window_bounds = array<i64: 1, 1>}, {transform_indices = @transform_12, window_bounds = array<i64: 1, 32, 256>}, {transform_indices = @transform_13, window_bounds = array<i64: 1, 1, 256>}]} {
    %c0 = arith.constant 0 : index
    %c0_0 = arith.constant 0 : index
    %0 = vector.load %arg3[%c0, %c0_0] : memref<64x64xf32, #tpu.memory_space<vmem>>, vector<64x64xf32>
    %c0_1 = arith.constant 0 : index
    %c0_2 = arith.constant 0 : index
    %c0_3 = arith.constant 0 : index
    %1 = vector.load %arg1[%c0_1, %c0_2, %c0_3] : memref<1x64x256xf32, #tpu.memory_space<vmem>>, vector<1x64x256xf32>
    %2 = vector.shape_cast %1 : vector<1x64x256xf32> to vector<64x256xf32>
    %cst = arith.constant dense<0.000000e+00> : vector<64x256xf32>
    %3 = tpu.matmul %0, %2, %cst {dimension_numbers = #tpu.dot_dimension_numbers<[1], [0], [0], [1], [0, 0, 1, 1], [], []>} : vector<64x64xf32>, vector<64x256xf32>, vector<64x256xf32> -> vector<64x256xf32>
    %c0_4 = arith.constant 0 : index
    %c0_5 = arith.constant 0 : index
    %4 = vector.load %arg4[%c0_4, %c0_5] : memref<64x32xf32, #tpu.memory_space<vmem>>, vector<64x32xf32>
    %c0_6 = arith.constant 0 : index
    %c0_7 = arith.constant 0 : index
    %c0_8 = arith.constant 0 : index
    %5 = vector.load %arg2[%c0_6, %c0_7, %c0_8] : memref<1x32x256xf32, #tpu.memory_space<vmem>>, vector<1x32x256xf32>
    %6 = vector.shape_cast %5 : vector<1x32x256xf32> to vector<32x256xf32>
    %cst_9 = arith.constant dense<0.000000e+00> : vector<64x256xf32>
    %7 = tpu.matmul %4, %6, %cst_9 {dimension_numbers = #tpu.dot_dimension_numbers<[1], [0], [0], [1], [0, 0, 1, 1], [], []>} : vector<64x32xf32>, vector<32x256xf32>, vector<64x256xf32> -> vector<64x256xf32>
    %8 = arith.addf %3, %7 : vector<64x256xf32>
    %c0_10 = arith.constant 0 : index
    %c0_11 = arith.constant 0 : index
    %9 = vector.load %arg5[%c0_10, %c0_11] : memref<64x1xf32, #tpu.memory_space<vmem>>, vector<64x1xf32>
    %10 = vector.broadcast %9 : vector<64x1xf32> to vector<64x256xf32>
    %11 = arith.addf %8, %10 : vector<64x256xf32>
    %cst_12 = arith.constant dense<0.000000e+00> : vector<64xf32>
    %12 = vector.multi_reduction <add>, %11, %cst_12 [1] : vector<64x256xf32> to vector<64xf32>
    %13 = vector.shape_cast %12 : vector<64xf32> to vector<64x1xf32>
    %cst_13 = arith.constant 2.560000e+02 : f32
    %14 = vector.broadcast %cst_13 : f32 to vector<64x1xf32>
    %15 = arith.divf %13, %14 : vector<64x1xf32>
    %cst_14 = arith.constant dense<0xFF800000> : vector<64xf32>
    %16 = vector.multi_reduction <maximumf>, %11, %cst_14 [1] : vector<64x256xf32> to vector<64xf32>
    %17 = vector.shape_cast %16 : vector<64xf32> to vector<64x1xf32>
    %c0_15 = arith.constant 0 : index
    %c0_16 = arith.constant 0 : index
    %18 = vector.load %arg6[%c0_15, %c0_16] : memref<8x64xf32, #tpu.memory_space<vmem>>, vector<8x64xf32>
    %cst_17 = arith.constant dense<0.000000e+00> : vector<8x1xf32>
    %19 = tpu.matmul %18, %15, %cst_17 {dimension_numbers = #tpu.dot_dimension_numbers<[1], [0], [0], [1], [0, 0, 1, 1], [], []>} : vector<8x64xf32>, vector<64x1xf32>, vector<8x1xf32> -> vector<8x1xf32>
    %c0_18 = arith.constant 0 : index
    %c0_19 = arith.constant 0 : index
    %20 = vector.load %arg7[%c0_18, %c0_19] : memref<8x1xf32, #tpu.memory_space<vmem>>, vector<8x1xf32>
    %21 = arith.addf %19, %20 : vector<8x1xf32>
    %cst_20 = arith.constant 0.000000e+00 : f32
    %22 = vector.broadcast %cst_20 : f32 to vector<8x1xf32>
    %23 = arith.maximumf %21, %22 : vector<8x1xf32>
    %c0_21 = arith.constant 0 : index
    %c0_22 = arith.constant 0 : index
    %24 = vector.load %arg6[%c0_21, %c0_22] : memref<8x64xf32, #tpu.memory_space<vmem>>, vector<8x64xf32>
    %cst_23 = arith.constant dense<0.000000e+00> : vector<8x1xf32>
    %25 = tpu.matmul %24, %17, %cst_23 {dimension_numbers = #tpu.dot_dimension_numbers<[1], [0], [0], [1], [0, 0, 1, 1], [], []>} : vector<8x64xf32>, vector<64x1xf32>, vector<8x1xf32> -> vector<8x1xf32>
    %c0_24 = arith.constant 0 : index
    %c0_25 = arith.constant 0 : index
    %26 = vector.load %arg7[%c0_24, %c0_25] : memref<8x1xf32, #tpu.memory_space<vmem>>, vector<8x1xf32>
    %27 = arith.addf %25, %26 : vector<8x1xf32>
    %cst_26 = arith.constant 0.000000e+00 : f32
    %28 = vector.broadcast %cst_26 : f32 to vector<8x1xf32>
    %29 = arith.maximumf %27, %28 : vector<8x1xf32>
    %c0_27 = arith.constant 0 : index
    %c0_28 = arith.constant 0 : index
    %30 = vector.load %arg8[%c0_27, %c0_28] : memref<64x8xf32, #tpu.memory_space<vmem>>, vector<64x8xf32>
    %31 = arith.addf %23, %29 : vector<8x1xf32>
    %cst_29 = arith.constant dense<0.000000e+00> : vector<64x1xf32>
    %32 = tpu.matmul %30, %31, %cst_29 {dimension_numbers = #tpu.dot_dimension_numbers<[1], [0], [0], [1], [0, 0, 1, 1], [], []>} : vector<64x8xf32>, vector<8x1xf32>, vector<64x1xf32> -> vector<64x1xf32>
    %c0_30 = arith.constant 0 : index
    %c0_31 = arith.constant 0 : index
    %33 = vector.load %arg9[%c0_30, %c0_31] : memref<64x1xf32, #tpu.memory_space<vmem>>, vector<64x1xf32>
    %34 = arith.addf %32, %33 : vector<64x1xf32>
    %35 = arith.negf %34 : vector<64x1xf32>
    %36 = math.exp %35 : vector<64x1xf32>
    %cst_32 = arith.constant 1.000000e+00 : f32
    %37 = vector.broadcast %cst_32 : f32 to vector<64x1xf32>
    %38 = arith.addf %37, %36 : vector<64x1xf32>
    %39 = arith.divf %37, %38 : vector<64x1xf32>
    %40 = vector.broadcast %39 : vector<64x1xf32> to vector<64x256xf32>
    %41 = arith.mulf %11, %40 : vector<64x256xf32>
    %42 = vector.extract_strided_slice %41 {offsets = [0, 0], sizes = [32, 256], strides = [1, 1]} : vector<64x256xf32> to vector<32x256xf32>
    %43 = vector.extract_strided_slice %41 {offsets = [32, 0], sizes = [32, 256], strides = [1, 1]} : vector<64x256xf32> to vector<32x256xf32>
    %cst_33 = arith.constant dense<0xFF800000> : vector<256xf32>
    %44 = vector.multi_reduction <maximumf>, %43, %cst_33 [0] : vector<32x256xf32> to vector<256xf32>
    %45 = vector.shape_cast %44 : vector<256xf32> to vector<1x256xf32>
    %cst_34 = arith.constant dense<0.000000e+00> : vector<256xf32>
    %46 = vector.multi_reduction <add>, %43, %cst_34 [0] : vector<32x256xf32> to vector<256xf32>
    %47 = vector.shape_cast %46 : vector<256xf32> to vector<1x256xf32>
    %cst_35 = arith.constant 3.200000e+01 : f32
    %48 = vector.broadcast %cst_35 : f32 to vector<1x256xf32>
    %49 = arith.divf %47, %48 : vector<1x256xf32>
    %c0_36 = arith.constant 0 : index
    %c0_37 = arith.constant 0 : index
    %50 = vector.load %arg10[%c0_36, %c0_37] : memref<256x256xf32, #tpu.memory_space<vmem>>, vector<256x256xf32>
    %cst_38 = arith.constant dense<0.000000e+00> : vector<1x256xf32>
    %51 = tpu.matmul %45, %50, %cst_38 {dimension_numbers = #tpu.dot_dimension_numbers<[1], [0], [0], [1], [0, 0, 1, 1], [], []>} : vector<1x256xf32>, vector<256x256xf32>, vector<1x256xf32> -> vector<1x256xf32>
    %c0_39 = arith.constant 0 : index
    %c0_40 = arith.constant 0 : index
    %52 = vector.load %arg11[%c0_39, %c0_40] : memref<256x256xf32, #tpu.memory_space<vmem>>, vector<256x256xf32>
    %cst_41 = arith.constant dense<0.000000e+00> : vector<1x256xf32>
    %53 = tpu.matmul %49, %52, %cst_41 {dimension_numbers = #tpu.dot_dimension_numbers<[1], [0], [0], [1], [0, 0, 1, 1], [], []>} : vector<1x256xf32>, vector<256x256xf32>, vector<1x256xf32> -> vector<1x256xf32>
    %54 = arith.addf %51, %53 : vector<1x256xf32>
    %c0_42 = arith.constant 0 : index
    %c0_43 = arith.constant 0 : index
    %55 = vector.load %arg12[%c0_42, %c0_43] : memref<1x1xf32, #tpu.memory_space<vmem>>, vector<1x1xf32>
    %56 = vector.broadcast %55 : vector<1x1xf32> to vector<1x256xf32>
    %57 = arith.addf %54, %56 : vector<1x256xf32>
    %58 = arith.negf %57 : vector<1x256xf32>
    %59 = math.exp %58 : vector<1x256xf32>
    %cst_44 = arith.constant 1.000000e+00 : f32
    %60 = vector.broadcast %cst_44 : f32 to vector<1x256xf32>
    %61 = arith.addf %60, %59 : vector<1x256xf32>
    %62 = arith.divf %60, %61 : vector<1x256xf32>
    %63 = vector.broadcast %62 : vector<1x256xf32> to vector<32x256xf32>
    %64 = arith.mulf %42, %63 : vector<32x256xf32>
    %65 = arith.addf %64, %42 : vector<32x256xf32>
    %c0_45 = arith.constant 0 : index
    %c0_46 = arith.constant 0 : index
    %c0_47 = arith.constant 0 : index
    %66 = vector.load %arg13[%c0_45, %c0_46, %c0_47] : memref<1x32x256xf32, #tpu.memory_space<vmem>>, vector<1x32x256xf32>
    %67 = vector.shape_cast %66 : vector<1x32x256xf32> to vector<32x256xf32>
    %68 = vector.shape_cast %65 : vector<32x256xf32> to vector<1x32x256xf32>
    tpu.vector_store %arg13[%c0_45, %c0_46, %c0_47], %68 {strides = array<i32>} : memref<1x32x256xf32, #tpu.memory_space<vmem>>, vector<1x32x256xf32>,
    %c0_48 = arith.constant 0 : index
    %c0_49 = arith.constant 0 : index
    %c0_50 = arith.constant 0 : index
    %69 = vector.load %arg14[%c0_48, %c0_49, %c0_50] : memref<1x1x256xf32, #tpu.memory_space<vmem>>, vector<1x1x256xf32>
    %70 = vector.shape_cast %69 : vector<1x1x256xf32> to vector<1x256xf32>
    %71 = vector.shape_cast %62 : vector<1x256xf32> to vector<1x1x256xf32>
    tpu.vector_store %arg14[%c0_48, %c0_49, %c0_50], %71 {strides = array<i32>} : memref<1x1x256xf32, #tpu.memory_space<vmem>>, vector<1x1x256xf32>,
    return
  }
  func.func @transform_0(%arg0: i32) -> (i32, i32, i32) {
    %c0_i32 = arith.constant 0 : i32
    %c0_i32_0 = arith.constant 0 : i32
    %c0_i32_1 = arith.constant 0 : i32
    return %arg0, %c0_i32, %c0_i32_0 : i32, i32, i32
  }
  func.func @transform_1(%arg0: i32) -> (i32, i32, i32) {
    %c0_i32 = arith.constant 0 : i32
    %c0_i32_0 = arith.constant 0 : i32
    %c0_i32_1 = arith.constant 0 : i32
    return %arg0, %c0_i32, %c0_i32_0 : i32, i32, i32
  }
  func.func @transform_2(%arg0: i32) -> (i32, i32) {
    %c0_i32 = arith.constant 0 : i32
    %c0_i32_0 = arith.constant 0 : i32
    %c0_i32_1 = arith.constant 0 : i32
    return %c0_i32, %c0_i32_0 : i32, i32
  }
  func.func @transform_3(%arg0: i32) -> (i32, i32) {
    %c0_i32 = arith.constant 0 : i32
    %c0_i32_0 = arith.constant 0 : i32
    %c0_i32_1 = arith.constant 0 : i32
    return %c0_i32, %c0_i32_0 : i32, i32
  }
  func.func @transform_4(%arg0: i32) -> (i32, i32) {
    %c0_i32 = arith.constant 0 : i32
    %c0_i32_0 = arith.constant 0 : i32
    %c0_i32_1 = arith.constant 0 : i32
    return %c0_i32, %c0_i32_0 : i32, i32
  }
  func.func @transform_5(%arg0: i32) -> (i32, i32) {
    %c0_i32 = arith.constant 0 : i32
    %c0_i32_0 = arith.constant 0 : i32
    %c0_i32_1 = arith.constant 0 : i32
    return %c0_i32, %c0_i32_0 : i32, i32
  }
  func.func @transform_6(%arg0: i32) -> (i32, i32) {
    %c0_i32 = arith.constant 0 : i32
    %c0_i32_0 = arith.constant 0 : i32
    %c0_i32_1 = arith.constant 0 : i32
    return %c0_i32, %c0_i32_0 : i32, i32
  }
  func.func @transform_7(%arg0: i32) -> (i32, i32) {
    %c0_i32 = arith.constant 0 : i32
    %c0_i32_0 = arith.constant 0 : i32
    %c0_i32_1 = arith.constant 0 : i32
    return %c0_i32, %c0_i32_0 : i32, i32
  }
  func.func @transform_8(%arg0: i32) -> (i32, i32) {
    %c0_i32 = arith.constant 0 : i32
    %c0_i32_0 = arith.constant 0 : i32
    %c0_i32_1 = arith.constant 0 : i32
    return %c0_i32, %c0_i32_0 : i32, i32
  }
  func.func @transform_9(%arg0: i32) -> (i32, i32) {
    %c0_i32 = arith.constant 0 : i32
    %c0_i32_0 = arith.constant 0 : i32
    %c0_i32_1 = arith.constant 0 : i32
    return %c0_i32, %c0_i32_0 : i32, i32
  }
  func.func @transform_10(%arg0: i32) -> (i32, i32) {
    %c0_i32 = arith.constant 0 : i32
    %c0_i32_0 = arith.constant 0 : i32
    %c0_i32_1 = arith.constant 0 : i32
    return %c0_i32, %c0_i32_0 : i32, i32
  }
  func.func @transform_11(%arg0: i32) -> (i32, i32) {
    %c0_i32 = arith.constant 0 : i32
    %c0_i32_0 = arith.constant 0 : i32
    %c0_i32_1 = arith.constant 0 : i32
    return %c0_i32, %c0_i32_0 : i32, i32
  }
  func.func @transform_12(%arg0: i32) -> (i32, i32, i32) {
    %c0_i32 = arith.constant 0 : i32
    %c0_i32_0 = arith.constant 0 : i32
    %c0_i32_1 = arith.constant 0 : i32
    return %arg0, %c0_i32, %c0_i32_0 : i32, i32, i32
  }
  func.func @transform_13(%arg0: i32) -> (i32, i32, i32) {
    %c0_i32 = arith.constant 0 : i32
    %c0_i32_0 = arith.constant 0 : i32
    %c0_i32_1 = arith.constant 0 : i32
    return %arg0, %c0_i32, %c0_i32_0 : i32, i32, i32
  }
}

</mosaic_0001>

<bundles_post_ra>
// kernel: dwnet_forward.1
= control target key start
LH: loop header
LB: loop body
LE: loop exit
PB: predicated region body
PF: predicated region fallthrough
CT: control target
= control target key end

     0   :  { %s2262_s27 = smov 0   ;;  %s2958_s0 = inlined_call_operand.vmem [shape: f32[2,64,256], index: 0, kind: input, shape index: {}]   ;;  %s2959_s1 = inlined_call_operand.vmem [shape: f32[2,32,256], index: 1, kind: input, shape index: {}]   ;;  %s2960_s2 = inlined_call_operand.vmem [shape: f32[64,64], index: 2, kind: input, shape index: {}]   ;;  %s2961_s3 = inlined_call_operand.vmem [shape: f32[64,32], index: 3, kind: input, shape index: {}]   ;;  %s2962_s4 = inlined_call_operand.vmem [shape: f32[64,1], index: 4, kind: input, shape index: {}]   ;;  %s2963_s5 = inlined_call_operand.vmem [shape: f32[8,64], index: 5, kind: input, shape index: {}]   ;;  %s2964_s6 = inlined_call_operand.vmem [shape: f32[8,1], index: 6, kind: input, shape index: {}]   ;;  %s2965_s7 = inlined_call_operand.vmem [shape: f32[64,8], index: 7, kind: input, shape index: {}]   ;;  %s2966_s8 = inlined_call_operand.vmem [shape: f32[64,1], index: 8, kind: input, shape index: {}]   ;;  %s2967_s9 = inlined_call_operand.vmem [shape: f32[256,256], index: 9, kind: input, shape index: {}]   ;;  %s2968_s10 = inlined_call_operand.vmem [shape: f32[256,256], index: 10, kind: input, shape index: {}]   ;;  %s2969_s11 = inlined_call_operand.<no memory space> [shape: f32[1,1], index: 11, kind: input, shape index: {}]   ;;  %s2970_s12 = inlined_call_operand.vmem [shape: f32[2,32,256], index: 12, kind: output, shape index: {0}]   ;;  %s2971_s13 = inlined_call_operand.vmem [shape: f32[2,1,256], index: 13, kind: output, shape index: {1}]  }
   0x1   :  { %v19_v0 = vstv %s2969_s11 }
   0x2   :  { %20 = vst [vmem:[#allocation2] sm:$0x1] %v19_v0 }
   0x3 LB: > { %s1795_s28 = sadd.s32 4294967295, %s2182_s27   ;;  %p1799_p0 = scmp.ge.s32.totalorder %s2182_s27, 1  ;;  %s2182_s27 = sphi %s2262_s27, %s26_s27  }
   0x4   : > { %p402_p1 = scmp.lt.s32.totalorder %s2182_s27, 3 }
   0x6   : > { %p403_p2 = pnand %p1799_p0, %p402_p1 }
   0x7   : > { %p455_p3 = scmp.lt.s32.totalorder (!%p403_p2), %s1795_s28, 1  ;;  %v2184_v1 = vmov (!%p403_p2), 0.0   ;;  %v2185_v2 = vmov (!%p403_p2), 0   ;;  %v790_v3 = vld [vmem:[%s2962_s4] sm:$0xff] (!%p403_p2)  ;;  %v791_v4 = vld [vmem:[%s2962_s4 + $0x8] sm:$0xff] (!%p403_p2)  ;;  %vm514_vm0 = vcmask (!%p403_p2), 261120  }
   0x8   : > { %406 = sbr.rel (%p403_p2) target bundleno = 1348 (0x544), region = 68  ;;  %603 = vmatprep.mubr.f32.mxu0 (!%p403_p2), %v2184_v1  ;;  %2134 = vset.pattern.permute.xlu0 (!%p403_p2), %v2185_v2  ;;  %v498_v24 = vld [vmem:[%s2961_s3] sm:$0xff] (!%p403_p2)  ;;  %v792_v26 = vld [vmem:[%s2962_s4 + $0x10] sm:$0xff] (!%p403_p2)  ;;  %v793_v33 = vld [vmem:[%s2962_s4 + $0x18] sm:$0xff] (!%p403_p2)  ;;  %vm652_vm1 = vcmask (!%p403_p2), 523264   ;;  %vm2187_vm2 = vmmov (!%p403_p2), 0  }
   0x9   : > { %2135 = vset.pattern.permute.xlu1 (!%p403_p2), %v2185_v2  ;;  %800 = vperm.xlu0 (!%p403_p2), %2134, %v790_v3   ;;  %v794_v27 = vld [vmem:[%s2962_s4 + $0x20] sm:$0xff] (!%p403_p2)  ;;  %v796_v34 = vld [vmem:[%s2962_s4 + $0x30] sm:$0xff] (!%p403_p2)  ;;  %v499_v35 = vld [vmem:[%s2961_s3 + $0x8] sm:$0xff] (!%p403_p2)  ;;  %vm1075_vm3 = vcmask (!%p403_p2), 64512  }
   0xa   : > { %810 = vperm.xlu1 (!%p403_p2), %2135, %v792_v26   ;;  %v795_v42 = vld [vmem:[%s2962_s4 + $0x28] sm:$0xff] (!%p403_p2)  ;;  %v500_v43 = vld [vmem:[%s2961_s3 + $0x10] sm:$0xff] (!%p403_p2)  ;;  %v797_v48 = vld [vmem:[%s2962_s4 + $0x38] sm:$0xff] (!%p403_p2)  ;;  %1891 = vmatprep.mubr.msk.f32.mxu1 (!%p403_p2), %vm2187_vm2, %v2184_v1 }
   0xb   : > { %v501_v49 = vld [vmem:[%s2961_s3 + $0x18] sm:$0xff] (!%p403_p2)  ;;  %v502_v51 = vld [vmem:[%s2961_s3 + $0x20] sm:$0xff] (!%p403_p2)  ;;  %v503_v52 = vld [vmem:[%s2961_s3 + $0x28] sm:$0xff] (!%p403_p2) }
   0xc   : > { %v504_v53 = vld [vmem:[%s2961_s3 + $0x30] sm:$0xff] (!%p403_p2)  ;;  %v505_v54 = vld [vmem:[%s2961_s3 + $0x38] sm:$0xff] (!%p403_p2)  ;;  %v474_v55 = vld [vmem:[%s2960_s2] sm:$0xff] (!%p403_p2) }
   0xd   : > { %805 = vperm.xlu0 (!%p403_p2), %2134, %v791_v4   ;;  %v475_v56 = vld [vmem:[%s2960_s2 + $0x8] sm:$0xff] (!%p403_p2)  ;;  %v476_v57 = vld [vmem:[%s2960_s2 + $0x10] sm:$0xff] (!%p403_p2)  ;;  %v477_v58 = vld [vmem:[%s2960_s2 + $0x18] sm:$0xff] (!%p403_p2) }
   0xe   : > { %815 = vperm.xlu1 (!%p403_p2), %2135, %v793_v33   ;;  %v478_v59 = vld [vmem:[%s2960_s2 + $0x20] sm:$0xff] (!%p403_p2)  ;;  %v479_v60 = vld [vmem:[%s2960_s2 + $0x28] sm:$0xff] (!%p403_p2)  ;;  %v480_v61 = vld [vmem:[%s2960_s2 + $0x30] sm:$0xff] (!%p403_p2) }
   0xf   : > { %s2973_s28 = smov (!%p455_p3, %s1795_s28), 1  ;;  %v481_v62 = vld [vmem:[%s2960_s2 + $0x38] sm:$0xff] }
  0x10   : > { %s1845_s11 = sshll.u32 %s2973_s28, 7  ;;  %s1846_s29 = sshll.u32 %s2973_s28, 6 }
  0x11   : > { %s2278_s15 = scalar_lea.vmem %s2958_s0, %s1845_s11  ;;  %s464_s18 = scalar_lea.vmem %s2959_s1, %s1846_s29  ;;  %820 = vperm.xlu0 %2134, %v794_v27  }
  0x12   : > { %v507_v5 = vld [vmem:[%s464_s18 + $0x8] sm:$0xff]  ;;  %v509_v6 = vld [vmem:[%s464_s18 + $0x18] sm:$0xff]  ;;  %v506_v7 = vld [vmem:[%s464_s18] sm:$0xff]  ;;  %825 = vperm.xlu1 %2135, %v795_v42   ;;  %s469_s17 = scalar_lea.vmem %s2970_s12, %s1846_s29 }
  0x13   : > { %v1927_v8 = vpack.c.bf16 %v509_v6, %v507_v5  ;;  %v508_v9 = vld [vmem:[%s464_s18 + $0x10] sm:$0xff]  ;;  %v511_v10 = vld [vmem:[%s464_s18 + $0x28] sm:$0xff]  ;;  %v513_v11 = vld [vmem:[%s464_s18 + $0x38] sm:$0xff] }
  0x14   : > { %v1929_v12 = vpack.c.bf16 %v508_v9, %v506_v7  ;;  %v1931_v13 = vpack.c.bf16 %v513_v11, %v511_v10  ;;  %v510_v14 = vld [vmem:[%s464_s18 + $0x20] sm:$0xff]  ;;  %v512_v15 = vld [vmem:[%s464_s18 + $0x30] sm:$0xff]  ;;  %v483_v16 = vld [vmem:[%s2278_s15 + $0x8] sm:$0xff]  ;;  %s1806_s18 = sshll.u32 %s2973_s28, 1 }
  0x15   : > { %1928 = vmatprep.subr.bf16.mxu0 %v1927_v8  ;;  %v485_v17 = vld [vmem:[%s2278_s15 + $0x18] sm:$0xff]  ;;  %v1933_v18 = vpack.c.bf16 %v512_v15, %v510_v14  ;;  %v482_v20 = vld [vmem:[%s2278_s15] sm:$0xff]  ;;  %v484_v21 = vld [vmem:[%s2278_s15 + $0x10] sm:$0xff]  ;;  %830 = vperm.xlu0 %2134, %v796_v34   ;;  %s473_s20 = scalar_lea.vmem %s2971_s13, %s1806_s18 }
  0x16   : > { %1930 = vmatpush1.bf16.msra.mxu0 %v1929_v12  ;;  %v1935_v19 = vpack.c.bf16 %v485_v17, %v483_v16  ;;  %v487_v22 = vld [vmem:[%s2278_s15 + $0x28] sm:$0xff]  ;;  %v489_v23 = vld [vmem:[%s2278_s15 + $0x38] sm:$0xff]  ;;  %v1937_v25 = vpack.c.bf16 %v484_v21, %v482_v20  ;;  %v486_v29 = vld [vmem:[%s2278_s15 + $0x20] sm:$0xff]  ;;  %835 = vperm.xlu1 %2135, %v797_v48  }
  0x17   : > { %1932 = vmatprep.subr.bf16.mxu0 %v1931_v13  ;;  %v1939_v28 = vpack.c.bf16 %v489_v23, %v487_v22  ;;  %v488_v30 = vld [vmem:[%s2278_s15 + $0x30] sm:$0xff]  ;;  %v491_v31 = vld [vmem:[%s2278_s15 + $0x48] sm:$0xff]  ;;  %v493_v32 = vld [vmem:[%s2278_s15 + $0x58] sm:$0xff] }
  0x18   : > { %v1941_v36 = vpack.c.bf16 %v488_v30, %v486_v29  ;;  %v1943_v37 = vpack.c.bf16 %v493_v32, %v491_v31  ;;  %v490_v38 = vld [vmem:[%s2278_s15 + $0x40] sm:$0xff]  ;;  %v492_v39 = vld [vmem:[%s2278_s15 + $0x50] sm:$0xff]  ;;  %v495_v40 = vld [vmem:[%s2278_s15 + $0x68] sm:$0xff] }
  0x19   : > { %v497_v41 = vld [vmem:[%s2278_s15 + $0x78] sm:$0xff]  ;;  %v1945_v44 = vpack.c.bf16 %v492_v39, %v490_v38  ;;  %v494_v46 = vld [vmem:[%s2278_s15 + $0x60] sm:$0xff]  ;;  %v496_v47 = vld [vmem:[%s2278_s15 + $0x70] sm:$0xff] }
  0x1a   : > { %1934 = vmatpush1.bf16.msra.mxu0 %v1933_v18  ;;  %v1947_v45 = vpack.c.bf16 %v497_v41, %v495_v40  ;;  %v1949_v50 = vpack.c.bf16 %v496_v47, %v494_v46  ;;  %v2186_v40 = vmov 0.0|0.0  }
  0x1b   : > { %1936 = vmatprep.subr.bf16.mxu0 %v1935_v19  ;;  %1951 = vmatprep.subr.bf16.mxu1 %v2186_v40 }
  0x1d   : > { %1807 = vmatmul.mubr.msk.f32.vlgmr.msra.gmra.mrb[0].mxu0 %vm514_vm0, %v498_v24 }
  0x1e   : > { %609 = vmatprep.mubr.f32.mxu0 %v2184_v1  ;;  %1938 = vmatpush1.bf16.msra.mxu0 %v1937_v25 }
  0x1f   : > { %1940 = vmatprep.subr.bf16.mxu0 %v1939_v28 }
  0x21   : > { %1808 = vmatmul.mubr.msk.f32.gmra.mrb[2].mxu0 %vm514_vm0, %v499_v35 }
  0x22   : > { %615 = vmatprep.mubr.f32.mxu0 %v2184_v1  ;;  %1942 = vmatpush1.bf16.msra.mxu0 %v1941_v36 }
  0x23   : > { %1944 = vmatprep.subr.bf16.mxu0 %v1943_v37 }
  0x25   : > { %1809 = vmatmul.mubr.msk.f32.gmra.mrb[4].mxu0 %vm514_vm0, %v500_v43 }
  0x26   : > { %621 = vmatprep.mubr.f32.mxu0 %v2184_v1  ;;  %1946 = vmatpush1.bf16.msra.mxu0 %v1945_v44 }
  0x27   : > { %1948 = vmatprep.subr.bf16.mxu0 %v1947_v45 }
  0x29   : > { %1810 = vmatmul.mubr.msk.f32.gmra.mrb[6].mxu0 %vm514_vm0, %v501_v49 }
  0x2a   : > { %627 = vmatprep.mubr.f32.mxu0 %v2184_v1  ;;  %1950 = vmatpush1.bf16.msra.mxu0 %v1949_v50 }
  0x2d   : > { %1811 = vmatmul.mubr.msk.f32.gmra.mrb[8].mxu0 %vm514_vm0, %v502_v51 }
  0x2e   : > { %633 = vmatprep.mubr.f32.mxu0 %v2184_v1 }
  0x31   : > { %1812 = vmatmul.mubr.msk.f32.gmra.mrb[10].mxu0 %vm514_vm0, %v503_v52 }
  0x32   : > { %639 = vmatprep.mubr.f32.mxu0 %v2184_v1 }
  0x35   : > { %1813 = vmatmul.mubr.msk.f32.gmra.mrb[12].mxu0 %vm514_vm0, %v504_v53 }
  0x36   : > { %645 = vmatprep.mubr.f32.mxu0 %v2184_v1 }
  0x39   : > { %1814 = vmatmul.mubr.msk.f32.gmra.mrb[14].mxu0 %vm514_vm0, %v505_v54 }
  0x3a   : > { %741 = vmatprep.mubr.f32.mxu0 %v2184_v1 }
  0x3d   : > { %1815 = vmatmul.mubr.msk.f32.vlgmr.msra.gmra.mrb[0].mxu0 %vm652_vm1, %v474_v55 }
  0x3e   : > { %747 = vmatprep.mubr.f32.mxu0 %v2184_v1 }
  0x41   : > { %1816 = vmatmul.mubr.msk.f32.gmra.mrb[2].mxu0 %vm652_vm1, %v475_v56 }
  0x42   : > { %753 = vmatprep.mubr.f32.mxu0 %v2184_v1 }
  0x45   : > { %1817 = vmatmul.mubr.msk.f32.gmra.mrb[4].mxu0 %vm652_vm1, %v476_v57 }
  0x46   : > { %759 = vmatprep.mubr.f32.mxu0 %v2184_v1 }
  0x49   : > { %1818 = vmatmul.mubr.msk.f32.gmra.mrb[6].mxu0 %vm652_vm1, %v477_v58 }
  0x4a   : > { %765 = vmatprep.mubr.f32.mxu0 %v2184_v1 }
  0x4d   : > { %1819 = vmatmul.mubr.msk.f32.gmra.mrb[8].mxu0 %vm652_vm1, %v478_v59 }
  0x4e   : > { %771 = vmatprep.mubr.f32.mxu0 %v2184_v1 }
  0x51   : > { %1820 = vmatmul.mubr.msk.f32.gmra.mrb[10].mxu0 %vm652_vm1, %v479_v60 }
  0x52   : > { %777 = vmatprep.mubr.f32.mxu0 %v2184_v1 }
  0x55   : > { %1821 = vmatmul.mubr.msk.f32.gmra.mrb[12].mxu0 %vm652_vm1, %v480_v61 }
  0x56   : > { %783 = vmatprep.mubr.f32.mxu0 %v2184_v1 }
  0x59   : > { %1822 = vmatmul.mubr.msk.f32.gmra.mrb[14].mxu0 %vm652_vm1, %v481_v62 }
  0x88   : > { %v801_v63 = vpop.permute.xlu0 %800 }
  0x89   : > { %v811_v10 = vpop.permute.xlu1 %810 }
  0x8c   : > { %v806_v5 = vpop.permute.xlu0 %805 }
  0x8d   : > { %v816_v17 = vpop.permute.xlu1 %815 }
  0x90   : > { %v821_v23 = vpop.permute.xlu0 %820 }
  0x91   : > { %v826_v29 = vpop.permute.xlu1 %825 }
  0x94   : > { %v831_v35 = vpop.permute.xlu0 %830 }
  0x95   : > { %v836_v42 = vpop.permute.xlu1 %835 }
 0x110   : > { %v743_v0 = vpop.f32.mrb[0].mxu0 }
 0x111   : > { %v2404_v2 = vadd.f32 %v801_v63, %v743_v0  ;;  %v745_v3 = vpop.f32.mrb[1].mxu0 }
 0x112   : > { %v2406_v4 = vadd.f32 %v801_v63, %v745_v3 }
 0x114   : > { %v749_v6 = vpop.f32.mrb[2].mxu0  ;;  %v854_v7 = vadd.f32 %v2406_v4, %v2404_v2  ;;  %v887_v48 = vmax.f32 %v2404_v2, %v2406_v4 }
 0x115   : > { %v2410_v8 = vadd.f32 %v806_v5, %v749_v6  ;;  %v751_v9 = vpop.f32.mrb[3].mxu0 }
 0x116   : > { %v2412_v11 = vadd.f32 %v806_v5, %v751_v9  ;;  %855 = vadd.xlane.f32.xlu0 %v854_v7 }
 0x118   : > { %v755_v12 = vpop.f32.mrb[4].mxu0  ;;  %v857_v13 = vadd.f32 %v2412_v11, %v2410_v8  ;;  %v890_v51 = vmax.f32 %v2410_v8, %v2412_v11 }
 0x119   : > { %v2416_v14 = vadd.f32 %v811_v10, %v755_v12  ;;  %v757_v15 = vpop.f32.mrb[5].mxu0 }
 0x11a   : > { %v2418_v16 = vadd.f32 %v811_v10, %v757_v15  ;;  %858 = vadd.xlane.f32.xlu1 %v857_v13 }
 0x11c   : > { %v761_v18 = vpop.f32.mrb[6].mxu0  ;;  %v860_v19 = vadd.f32 %v2418_v16, %v2416_v14  ;;  %v893_v50 = vmax.f32 %v2416_v14, %v2418_v16 }
 0x11d   : > { %v2422_v20 = vadd.f32 %v816_v17, %v761_v18  ;;  %v763_v21 = vpop.f32.mrb[7].mxu0 }
 0x11e   : > { %v2424_v22 = vadd.f32 %v816_v17, %v763_v21  ;;  %861 = vadd.xlane.f32.xlu0 %v860_v19 }
 0x120   : > { %v767_v24 = vpop.f32.mrb[8].mxu0  ;;  %v863_v25 = vadd.f32 %v2424_v22, %v2422_v20  ;;  %v896_v53 = vmax.f32 %v2422_v20, %v2424_v22 }
 0x121   : > { %v2428_v26 = vadd.f32 %v821_v23, %v767_v24  ;;  %v769_v27 = vpop.f32.mrb[9].mxu0  ;;  %v911_v24 = vld [vmem:[%s2963_s5] sm:$0xff] }
 0x122   : > { %v2430_v28 = vadd.f32 %v821_v23, %v769_v27  ;;  %864 = vadd.xlane.f32.xlu0 %v863_v25 }
 0x124   : > { %v773_v30 = vpop.f32.mrb[10].mxu0  ;;  %v866_v31 = vadd.f32 %v2430_v28, %v2428_v26  ;;  %v899_v52 = vmax.f32 %v2428_v26, %v2430_v28 }
 0x125   : > { %v2434_v32 = vadd.f32 %v826_v29, %v773_v30  ;;  %v775_v33 = vpop.f32.mrb[11].mxu0 }
 0x126   : > { %v2436_v34 = vadd.f32 %v826_v29, %v775_v33  ;;  %867 = vadd.xlane.f32.xlu1 %v866_v31 }
 0x128   : > { %v779_v36 = vpop.f32.mrb[12].mxu0  ;;  %v869_v37 = vadd.f32 %v2436_v34, %v2434_v32  ;;  %v902_v55 = vmax.f32 %v2434_v32, %v2436_v34 }
 0x129   : > { %v2440_v38 = vadd.f32 %v831_v35, %v779_v36  ;;  %v781_v39 = vpop.f32.mrb[13].mxu0 }
 0x12a   : > { %v2443_v41 = vadd.f32 %v831_v35, %v781_v39  ;;  %870 = vadd.xlane.f32.xlu0 %v869_v37 }
 0x12c   : > { %v785_v43 = vpop.f32.mrb[14].mxu0  ;;  %v872_v44 = vadd.f32 %v2443_v41, %v2440_v38  ;;  %v905_v54 = vmax.f32 %v2440_v38, %v2443_v41 }
 0x12d   : > { %v2447_v45 = vadd.f32 %v836_v42, %v785_v43  ;;  %v787_v46 = vpop.f32.mrb[15].mxu0 }
 0x12e   : > { %v2449_v47 = vadd.f32 %v836_v42, %v787_v46  ;;  %873 = vadd.xlane.f32.xlu1 %v872_v44  ;;  %v912_v44 = vld [vmem:[%s2964_s6] sm:$0xff] }
 0x130   : > { %v875_v49 = vadd.f32 %v2449_v47, %v2447_v45  ;;  %v908_v56 = vmax.f32 %v2447_v45, %v2449_v47 }
 0x132   : > { %888 = vmax.xlane.f32.xlu1 %v887_v48  ;;  %876 = vadd.xlane.f32.xlu0 %v875_v49 }
 0x136   : > { %894 = vmax.xlane.f32.xlu1 %v893_v50  ;;  %891 = vmax.xlane.f32.xlu0 %v890_v51 }
 0x13a   : > { %900 = vmax.xlane.f32.xlu1 %v899_v52  ;;  %897 = vmax.xlane.f32.xlu0 %v896_v53  ;;  %v1059_v53 = vld [vmem:[%s2965_s7 + $0x8] sm:$0xff] }
 0x13e   : > { %906 = vmax.xlane.f32.xlu1 %v905_v54  ;;  %903 = vmax.xlane.f32.xlu0 %v902_v55  ;;  %v1060_v54 = vld [vmem:[%s2965_s7 + $0x10] sm:$0xff]  ;;  %v1061_v55 = vld [vmem:[%s2965_s7 + $0x18] sm:$0xff] }
 0x142   : > { %909 = vmax.xlane.f32.xlu0 %v908_v56  ;;  %v1062_v56 = vld [vmem:[%s2965_s7 + $0x20] sm:$0xff] }
 0x1a3   : > { %v856_v57 = vpop.xlane.xlu0 %855 }
 0x1a4   : > { %v879_v59 = vmul.f32 0.00390625, %v856_v57  ;;  %v1063_v57 = vld [vmem:[%s2965_s7 + $0x28] sm:$0xff] }
 0x1a7   : > { %v859_v58 = vpop.xlane.xlu1 %858 }
 0x1a8   : > { %v880_v60 = vmul.f32 0.00390625, %v859_v58  ;;  %v1064_v58 = vld [vmem:[%s2965_s7 + $0x30] sm:$0xff] }
 0x1aa   : > { %v1952_v61 = vpack.c.bf16 %v880_v60, %v879_v59  ;;  %v1065_v59 = vld [vmem:[%s2965_s7 + $0x38] sm:$0xff]  ;;  %v1413_v60 = vld [vmem:[%s2968_s10 + $0x8] sm:$0xff] }
 0x1ab   : > { %v862_v62 = vpop.xlane.xlu0 %861 }
 0x1ac   : > { %1953 = vmatpush3.bf16.msra.mxu1 %v1952_v61  ;;  %v881_v0 = vmul.f32 0.00390625, %v862_v62  ;;  %v1415_v61 = vld [vmem:[%s2968_s10 + $0x18] sm:$0xff]  ;;  %v1349_v62 = vld [vmem:[%s2967_s9 + $0x8] sm:$0xff] }
 0x1ad   : > { %1954 = vmatprep.subr.bf16.mxu1 %v2186_v40 }
 0x1af   : > { %v865_v63 = vpop.xlane.xlu0 %864 }
 0x1b0   : > { %v882_v3 = vmul.f32 0.00390625, %v865_v63  ;;  %v1975_v63 = vpack.c.bf16 %v1415_v61, %v1413_v60  ;;  %v1365_v60 = vld [vmem:[%s2967_s9 + $0x88] sm:$0xff]  ;;  %v1367_v61 = vld [vmem:[%s2967_s9 + $0x98] sm:$0xff] }
 0x1b2   : > { %v1955_v5 = vpack.c.bf16 %v882_v3, %v881_v0  ;;  %v1351_v0 = vld [vmem:[%s2967_s9 + $0x18] sm:$0xff]  ;;  %v1412_v3 = vld [vmem:[%s2968_s10] sm:$0xff]  ;;  %1976 = vmatprep.subr.bf16.mxu0 %v1975_v63 }
 0x1b3   : > { %v868_v6 = vpop.xlane.xlu1 %867 }
 0x1b4   : > { %1956 = vmatpush3.bf16.msra.mxu1 %v1955_v5  ;;  %v883_v9 = vmul.f32 0.00390625, %v868_v6  ;;  %v1414_v5 = vld [vmem:[%s2968_s10 + $0x10] sm:$0xff]  ;;  %v2039_v6 = vpack.c.bf16 %v1351_v0, %v1349_v62 }
 0x1b5   : > { %1957 = vmatprep.subr.bf16.mxu1 %v2186_v40 }
 0x1b7   : > { %v871_v7 = vpop.xlane.xlu0 %870 }
 0x1b8   : > { %v884_v10 = vmul.f32 0.00390625, %v871_v7  ;;  %v1977_v7 = vpack.c.bf16 %v1414_v5, %v1412_v3  ;;  %v1428_v3 = vld [vmem:[%s2968_s10 + $0x80] sm:$0xff]  ;;  %v1430_v5 = vld [vmem:[%s2968_s10 + $0x90] sm:$0xff] }
 0x1ba   : > { %v1958_v12 = vpack.c.bf16 %v884_v10, %v883_v9  ;;  %v1348_v9 = vld [vmem:[%s2967_s9] sm:$0xff]  ;;  %v1350_v10 = vld [vmem:[%s2967_s9 + $0x10] sm:$0xff]  ;;  %1978 = vmatpush1.bf16.msra.mxu0 %v1977_v7  ;;  %v2055_v7 = vpack.c.bf16 %v1367_v61, %v1365_v60  ;;  %v1381_v60 = vld [vmem:[%s2967_s9 + $0x108] sm:$0xff] }
 0x1bb   : > { %v874_v13 = vpop.xlane.xlu1 %873  ;;  %v1383_v61 = vld [vmem:[%s2967_s9 + $0x118] sm:$0xff] }
 0x1bc   : > { %1959 = vmatpush3.bf16.msra.mxu1 %v1958_v12  ;;  %v885_v18 = vmul.f32 0.00390625, %v874_v13  ;;  %v1417_v12 = vld [vmem:[%s2968_s10 + $0x28] sm:$0xff]  ;;  %v2041_v13 = vpack.c.bf16 %v1350_v10, %v1348_v9  ;;  %v1366_v9 = vld [vmem:[%s2967_s9 + $0x90] sm:$0xff] }
 0x1bd   : > { %1960 = vmatprep.subr.bf16.mxu1 %v2186_v40  ;;  %v1433_v10 = vld [vmem:[%s2968_s10 + $0xa8] sm:$0xff] }
 0x1bf   : > { %v889_v15 = vpop.xlane.xlu1 %888  ;;  %v877_v17 = vpop.xlane.xlu0 %876 }
 0x1c0   : > { %v886_v19 = vmul.f32 0.00390625, %v877_v17  ;;  %v1353_v17 = vld [vmem:[%s2967_s9 + $0x28] sm:$0xff] }
 0x1c2   : > { %v1961_v21 = vpack.c.bf16 %v886_v19, %v885_v18  ;;  %v1355_v18 = vld [vmem:[%s2967_s9 + $0x38] sm:$0xff] }
 0x1c3   : > { %v892_v23 = vpop.xlane.xlu0 %891  ;;  %v895_v25 = vpop.xlane.xlu1 %894 }
 0x1c4   : > { %1962 = vmatpush3.bf16.msra.mxu1 %v1961_v21  ;;  %v1964_v27 = vpack.c.bf16 %v892_v23, %v889_v15  ;;  %v1419_v15 = vld [vmem:[%s2968_s10 + $0x38] sm:$0xff]  ;;  %v2043_v21 = vpack.c.bf16 %v1355_v18, %v1353_v17  ;;  %v1416_v23 = vld [vmem:[%s2968_s10 + $0x20] sm:$0xff]  ;;  %v1993_v17 = vpack.c.bf16 %v1430_v5, %v1428_v3  ;;  %v1446_v5 = vld [vmem:[%s2968_s10 + $0x110] sm:$0xff] }
 0x1c5   : > { %1963 = vmatprep.subr.bf16.mxu1 %v2186_v40  ;;  %v1979_v19 = vpack.c.bf16 %v1419_v15, %v1417_v12  ;;  %v1435_v12 = vld [vmem:[%s2968_s10 + $0xb8] sm:$0xff]  ;;  %v1444_v3 = vld [vmem:[%s2968_s10 + $0x100] sm:$0xff] }
 0x1c6   : > { %v1371_v15 = vld [vmem:[%s2967_s9 + $0xb8] sm:$0xff] }
 0x1c7   : > { %1892 = vmatmul.mubr.msk.f32.vlgmr.msra.gmra.mrb[0].mxu1 %vm652_vm1, %v911_v24  ;;  %v898_v29 = vpop.xlane.xlu0 %897  ;;  %v901_v31 = vpop.xlane.xlu1 %900  ;;  %1980 = vmatprep.subr.bf16.mxu0 %v1979_v19  ;;  %v1995_v19 = vpack.c.bf16 %v1435_v12, %v1433_v10  ;;  %v2009_v10 = vpack.c.bf16 %v1446_v5, %v1444_v3 }
 0x1c8   : > { %1965 = vmatpush3.bf16.msra.mxu1 %v1964_v27  ;;  %1910 = vmatprep.mubr.msk.f32.mxu1 %vm2187_vm2, %v2184_v1  ;;  %v1967_v30 = vpack.c.bf16 %v898_v29, %v895_v25  ;;  %v1058_v1 = vld [vmem:[%s2965_s7] sm:$0xff]  ;;  %v1354_v29 = vld [vmem:[%s2967_s9 + $0x30] sm:$0xff] }
 0x1c9   : > { %1966 = vmatprep.subr.bf16.mxu1 %v2186_v40  ;;  %v1352_v25 = vld [vmem:[%s2967_s9 + $0x20] sm:$0xff] }
 0x1cb   : > { %v904_v33 = vpop.xlane.xlu0 %903  ;;  %v907_v37 = vpop.xlane.xlu1 %906 }
 0x1cc   : > { %1968 = vmatpush3.bf16.msra.mxu1 %v1967_v30  ;;  %v1970_v35 = vpack.c.bf16 %v904_v33, %v901_v31  ;;  %v1421_v30 = vld [vmem:[%s2968_s10 + $0x48] sm:$0xff]  ;;  %v1423_v31 = vld [vmem:[%s2968_s10 + $0x58] sm:$0xff]  ;;  %v2045_v33 = vpack.c.bf16 %v1354_v29, %v1352_v25 }
 0x1cd   : > { %1969 = vmatprep.subr.bf16.mxu1 %v2186_v40  ;;  %v1437_v29 = vld [vmem:[%s2968_s10 + $0xc8] sm:$0xff] }
 0x1cf   : > { %v910_v36 = vpop.xlane.xlu0 %909 }
 0x1d0   : > { %1971 = vmatpush3.bf16.msra.mxu1 %v1970_v35  ;;  %v1973_v39 = vpack.c.bf16 %v910_v36, %v907_v37  ;;  %v1983_v35 = vpack.c.bf16 %v1423_v31, %v1421_v30  ;;  %v1357_v36 = vld [vmem:[%s2967_s9 + $0x48] sm:$0xff]  ;;  %v1359_v37 = vld [vmem:[%s2967_s9 + $0x58] sm:$0xff] }
 0x1d1   : > { %1972 = vmatprep.subr.bf16.mxu1 %v2186_v40  ;;  %v1439_v30 = vld [vmem:[%s2968_s10 + $0xd8] sm:$0xff]  ;;  %v1373_v31 = vld [vmem:[%s2967_s9 + $0xc8] sm:$0xff] }
 0x1d4   : > { %1974 = vmatpush3.bf16.msra.mxu1 %v1973_v39  ;;  %v1420_v39 = vld [vmem:[%s2968_s10 + $0x40] sm:$0xff] }
 0x1d7   : > { %1911 = vmatmul.mubr.msk.f32.vlgmr.msra.gmra.mrb[2].mxu1 %vm652_vm1, %v911_v24  ;;  %v1418_v24 = vld [vmem:[%s2968_s10 + $0x30] sm:$0xff] }
 0x1d8   : > { %1915 = vmatprep.mubr.msk.f32.mxu1 %vm1075_vm3, %v1058_v1  ;;  %v1981_v27 = vpack.c.bf16 %v1418_v24, %v1416_v23  ;;  %v2047_v1 = vpack.c.bf16 %v1359_v37, %v1357_v36  ;;  %v1434_v23 = vld [vmem:[%s2968_s10 + $0xb0] sm:$0xff]  ;;  %v1368_v24 = vld [vmem:[%s2967_s9 + $0xa0] sm:$0xff]  ;;  %v1999_v37 = vpack.c.bf16 %v1439_v30, %v1437_v29  ;;  %v1070_v30 = vld [vmem:[%s2966_s8 + $0x18] sm:$0xff] }
 0x1da   : > { %1982 = vmatpush1.bf16.msra.mxu0 %v1981_v27  ;;  %v1370_v27 = vld [vmem:[%s2967_s9 + $0xb0] sm:$0xff] }
 0x1db   : > { %1984 = vmatprep.subr.bf16.mxu0 %v1983_v35  ;;  %v2061_v36 = vpack.c.bf16 %v1370_v27, %v1368_v24 }
 0x29a   : > { %v982_v42 = vpop.f32.mrb[0].mxu1 }
 0x29b   : > { %v1893_v43 = vpop.f32.mrb[1].mxu1  ;;  %v983_v46 = vadd.f32 %v982_v42, %v912_v44  ;;  %v1422_v42 = vld [vmem:[%s2968_s10 + $0x50] sm:$0xff] }
 0x29c   : > { %v1356_v43 = vld [vmem:[%s2967_s9 + $0x40] sm:$0xff] }
 0x29d   : > { %v986_v50 = vmax.f32 %v983_v46, 0.0  ;;  %v1985_v46 = vpack.c.bf16 %v1422_v42, %v1420_v39  ;;  %v1436_v39 = vld [vmem:[%s2968_s10 + $0xc0] sm:$0xff] }
 0x29e   : > { %v1372_v42 = vld [vmem:[%s2967_s9 + $0xc0] sm:$0xff] }
 0x29f   : > { %1986 = vmatpush1.bf16.msra.mxu0 %v1985_v46  ;;  %v1441_v46 = vld [vmem:[%s2968_s10 + $0xe8] sm:$0xff] }
 0x2aa   : > { %v1053_v48 = vpop.f32.mrb[2].mxu1 }
 0x2ab   : > { %v1054_v40 = vadd.f32 %v1053_v48, %v912_v44  ;;  %v1912_v49 = vpop.f32.mrb[3].mxu1  ;;  %v1358_v44 = vld [vmem:[%s2967_s9 + $0x50] sm:$0xff]  ;;  %v1425_v48 = vld [vmem:[%s2968_s10 + $0x68] sm:$0xff] }
 0x2ac   : > { %v1361_v49 = vld [vmem:[%s2967_s9 + $0x68] sm:$0xff] }
 0x2ad   : > { %v1057_v51 = vmax.f32 %v1054_v40, 0.0  ;;  %v1427_v40 = vld [vmem:[%s2968_s10 + $0x78] sm:$0xff] }
 0x2af   : > { %v1066_v52 = vadd.f32 %v1057_v51, %v986_v50  ;;  %v2049_v50 = vpack.c.bf16 %v1358_v44, %v1356_v43  ;;  %v1987_v51 = vpack.c.bf16 %v1427_v40, %v1425_v48  ;;  %v1374_v44 = vld [vmem:[%s2967_s9 + $0xd0] sm:$0xff]  ;;  %v1443_v48 = vld [vmem:[%s2968_s10 + $0xf8] sm:$0xff]  ;;  %v1377_v40 = vld [vmem:[%s2967_s9 + $0xe8] sm:$0xff] }
 0x2b1   : > { %1913 = vmatprep.subr.mxu1 %v1066_v52  ;;  %1988 = vmatprep.subr.bf16.mxu0 %v1987_v51  ;;  %v2065_v51 = vpack.c.bf16 %v1374_v44, %v1372_v42  ;;  %v1067_v42 = vld [vmem:[%s2966_s8] sm:$0xff] }
 0x2b2   : > { %1914 = vmatpush3.msra.mxu1 %v1066_v52  ;;  %v1363_v52 = vld [vmem:[%s2967_s9 + $0x78] sm:$0xff] }
 0x2b3   : > { %1916 = vmatmul.mubr.msk.f32.vlgmr.msra.gmra.mrb[4].mxu1 %vm1075_vm3, %v1059_v53  ;;  %2040 = vmatprep.subr.bf16.mxu1 %v2039_v6  ;;  %v1424_v53 = vld [vmem:[%s2968_s10 + $0x60] sm:$0xff] }
 0x2b4   : > { %1918 = vmatprep.mubr.msk.f32.mxu1 %vm1075_vm3, %v1060_v54  ;;  %2042 = vmatpush1.bf16.msra.mxu1 %v2041_v13  ;;  %v1426_v54 = vld [vmem:[%s2968_s10 + $0x70] sm:$0xff]  ;;  %v1364_v6 = vld [vmem:[%s2967_s9 + $0x80] sm:$0xff]  ;;  %v1369_v13 = vld [vmem:[%s2967_s9 + $0xa8] sm:$0xff] }
 0x2b5   : > { %2044 = vmatprep.subr.bf16.mxu1 %v2043_v21  ;;  %v1989_v62 = vpack.c.bf16 %v1426_v54, %v1424_v53  ;;  %v2057_v18 = vpack.c.bf16 %v1366_v9, %v1364_v6  ;;  %v1432_v21 = vld [vmem:[%s2968_s10 + $0xa0] sm:$0xff]  ;;  %v2059_v25 = vpack.c.bf16 %v1371_v15, %v1369_v13  ;;  %v1442_v54 = vld [vmem:[%s2968_s10 + $0xf0] sm:$0xff]  ;;  %v2071_v6 = vpack.c.bf16 %v1383_v61, %v1381_v60 }
 0x2b6   : > { %v1997_v35 = vpack.c.bf16 %v1434_v23, %v1432_v21  ;;  %v1440_v53 = vld [vmem:[%s2968_s10 + $0xe0] sm:$0xff]  ;;  %v1382_v9 = vld [vmem:[%s2967_s9 + $0x110] sm:$0xff]  ;;  %v1072_v21 = vld [vmem:[%s2966_s8 + $0x28] sm:$0xff] }
 0x2b7   : > { %1919 = vmatmul.mubr.msk.f32.gmra.mrb[6].mxu1 %vm1075_vm3, %v1061_v55  ;;  %v2051_v55 = vpack.c.bf16 %v1363_v52, %v1361_v49  ;;  %1990 = vmatpush1.bf16.msra.mxu0 %v1989_v62  ;;  %v1379_v49 = vld [vmem:[%s2967_s9 + $0xf8] sm:$0xff]  ;;  %v2003_v52 = vpack.c.bf16 %v1443_v48, %v1441_v46  ;;  %v2005_v62 = vpack.c.bf16 %v1442_v54, %v1440_v53  ;;  %v1071_v23 = vld [vmem:[%s2966_s8 + $0x20] sm:$0xff] }
 0x2b8   : > { %1921 = vmatprep.mubr.msk.f32.mxu1 %vm1075_vm3, %v1062_v56  ;;  %2046 = vmatpush1.bf16.msra.mxu1 %v2045_v33  ;;  %v1360_v56 = vld [vmem:[%s2967_s9 + $0x60] sm:$0xff]  ;;  %v1375_v33 = vld [vmem:[%s2967_s9 + $0xd8] sm:$0xff] }
 0x2b9   : > { %2048 = vmatprep.subr.bf16.mxu1 %v2047_v1  ;;  %v1438_v1 = vld [vmem:[%s2968_s10 + $0xd0] sm:$0xff]  ;;  %v2063_v43 = vpack.c.bf16 %v1375_v33, %v1373_v31  ;;  %v1074_v33 = vld [vmem:[%s2966_s8 + $0x38] sm:$0xff] }
 0x2bb   : > { %1922 = vmatmul.mubr.msk.f32.gmra.mrb[8].mxu1 %vm1075_vm3, %v1063_v57  ;;  %v1362_v57 = vld [vmem:[%s2967_s9 + $0x70] sm:$0xff] }
 0x2bc   : > { %1924 = vmatprep.mubr.msk.f32.mxu1 %vm1075_vm3, %v1064_v58  ;;  %v1429_v58 = vld [vmem:[%s2968_s10 + $0x88] sm:$0xff]  ;;  %2050 = vmatpush1.bf16.msra.mxu1 %v2049_v50  ;;  %v2053_v63 = vpack.c.bf16 %v1362_v57, %v1360_v56  ;;  %v2001_v50 = vpack.c.bf16 %v1438_v1, %v1436_v39  ;;  %v2067_v56 = vpack.c.bf16 %v1379_v49, %v1377_v40  ;;  %v1378_v57 = vld [vmem:[%s2967_s9 + $0xf0] sm:$0xff] }
 0x2bd   : > { %2052 = vmatprep.subr.bf16.mxu1 %v2051_v55  ;;  %v1376_v55 = vld [vmem:[%s2967_s9 + $0xe0] sm:$0xff] }
 0x2bf   : > { %1925 = vmatmul.mubr.msk.f32.gmra.mrb[10].mxu1 %vm1075_vm3, %v1065_v59  ;;  %v1431_v59 = vld [vmem:[%s2968_s10 + $0x98] sm:$0xff] }
 0x2c0   : > { %v1991_v0 = vpack.c.bf16 %v1431_v59, %v1429_v58  ;;  %2054 = vmatpush1.bf16.msra.mxu1 %v2053_v63  ;;  %v1445_v58 = vld [vmem:[%s2968_s10 + $0x108] sm:$0xff]  ;;  %v1447_v59 = vld [vmem:[%s2968_s10 + $0x118] sm:$0xff]  ;;  %v2069_v63 = vpack.c.bf16 %v1378_v57, %v1376_v55 }
 0x2c1   : > { %2056 = vmatprep.subr.bf16.mxu1 %v2055_v7  ;;  %v1380_v7 = vld [vmem:[%s2967_s9 + $0x100] sm:$0xff] }
 0x2c2   : > { %1992 = vmatprep.subr.bf16.mxu0 %v1991_v0  ;;  %v2007_v0 = vpack.c.bf16 %v1447_v59, %v1445_v58  ;;  %v2073_v12 = vpack.c.bf16 %v1382_v9, %v1380_v7 }
 0x2c3   : > { %1994 = vmatpush1.bf16.msra.mxu0 %v1993_v17 }
 0x2c4   : > { %2058 = vmatpush1.bf16.msra.mxu1 %v2057_v18  ;;  %1996 = vmatprep.subr.bf16.mxu0 %v1995_v19  ;;  %v1068_v19 = vld [vmem:[%s2966_s8 + $0x8] sm:$0xff] }
 0x2c5   : > { %2060 = vmatprep.subr.bf16.mxu1 %v2059_v25 }
 0x2c7   : > { %1998 = vmatpush1.bf16.msra.mxu0 %v1997_v35 }
 0x2c8   : > { %2062 = vmatpush1.bf16.msra.mxu1 %v2061_v36  ;;  %2000 = vmatprep.subr.bf16.mxu0 %v1999_v37  ;;  %v1073_v36 = vld [vmem:[%s2966_s8 + $0x30] sm:$0xff] }
 0x2c9   : > { %2064 = vmatprep.subr.bf16.mxu1 %v2063_v43 }
 0x2cb   : > { %2002 = vmatpush1.bf16.msra.mxu0 %v2001_v50 }
 0x2cc   : > { %2066 = vmatpush1.bf16.msra.mxu1 %v2065_v51  ;;  %2004 = vmatprep.subr.bf16.mxu0 %v2003_v52  ;;  %v1069_v52 = vld [vmem:[%s2966_s8 + $0x10] sm:$0xff] }
 0x2cd   : > { %2068 = vmatprep.subr.bf16.mxu1 %v2067_v56 }
 0x2cf   : > { %2006 = vmatpush1.bf16.msra.mxu0 %v2005_v62 }
 0x2d0   : > { %2070 = vmatpush1.bf16.msra.mxu1 %v2069_v63  ;;  %2008 = vmatprep.subr.bf16.mxu0 %v2007_v0 }
 0x2d1   : > { %2072 = vmatprep.subr.bf16.mxu1 %v2071_v6 }
 0x2d3   : > { %2010 = vmatpush1.bf16.msra.mxu0 %v2009_v10  ;;  %v1449_v10 = vld [vmem:[%s2968_s10 + $0x128] sm:$0xff] }
 0x2d4   : > { %2074 = vmatpush1.bf16.msra.mxu1 %v2073_v12  ;;  %v1451_v12 = vld [vmem:[%s2968_s10 + $0x138] sm:$0xff] }
 0x386   : > { %v1917_v13 = vpop.f32.mrb[4].mxu1 }
 0x387   : > { %v1166_v15 = vpop.f32.mrb[5].mxu1  ;;  %v1172_v25 = vadd.f32 %v1917_v13, %v1068_v19  ;;  %v1385_v13 = vld [vmem:[%s2967_s9 + $0x128] sm:$0xff]  ;;  %v1387_v19 = vld [vmem:[%s2967_s9 + $0x138] sm:$0xff] }
 0x388   : > { %v1167_v49 = vadd.f32 %v1166_v15, %v1067_v42  ;;  %v1391_v42 = vld [vmem:[%s2967_s9 + $0x158] sm:$0xff] }
 0x389   : > { %v1834_v1 = vmul.f32 -1.442695, %v1172_v25  ;;  %v1618_v25 = vld [vmem:[#allocation2] sm:$0x1] }
 0x38a   : > { %v1920_v17 = vpop.f32.mrb[6].mxu1  ;;  %v1833_v53 = vmul.f32 -1.442695, %v1167_v49  ;;  %v1390_v49 = vld [vmem:[%s2967_s9 + $0x150] sm:$0xff] }
 0x38b   : > { %v1176_v18 = vpop.f32.mrb[7].mxu1  ;;  %v1182_v43 = vadd.f32 %v1920_v17, %v1070_v30  ;;  %v1384_v30 = vld [vmem:[%s2967_s9 + $0x120] sm:$0xff] }
 0x38c   : > { %v1177_v54 = vadd.f32 %v1176_v18, %v1069_v52  ;;  %v2011_v18 = vpack.c.bf16 %v1451_v12, %v1449_v10  ;;  %v1399_v12 = vld [vmem:[%s2967_s9 + $0x198] sm:$0xff] }
 0x38d   : > { %v1836_v51 = vmul.f32 -1.442695, %v1182_v43  ;;  %v1452_v43 = vld [vmem:[%s2968_s10 + $0x140] sm:$0xff] }
 0x38e   : > { %v1923_v24 = vpop.f32.mrb[8].mxu1  ;;  %v1835_v57 = vmul.f32 -1.442695, %v1177_v54  ;;  %2012 = vmatprep.subr.bf16.mxu0 %v2011_v18  ;;  %v1459_v54 = vld [vmem:[%s2968_s10 + $0x178] sm:$0xff]  ;;  %v1396_v18 = vld [vmem:[%s2967_s9 + $0x180] sm:$0xff] }
 0x38f   : > { %v1192_v27 = vadd.f32 %v1923_v24, %v1072_v21  ;;  %v1186_v29 = vpop.f32.mrb[9].mxu1  ;;  %v1448_v21 = vld [vmem:[%s2968_s10 + $0x120] sm:$0xff] }
 0x390   : > { %v1187_v31 = vadd.f32 %v1186_v29, %v1071_v23  ;;  %v1450_v23 = vld [vmem:[%s2968_s10 + $0x130] sm:$0xff] }
 0x391   : > { %v1838_v35 = vmul.f32 -1.442695, %v1192_v27  ;;  %v2075_v27 = vpack.c.bf16 %v1387_v19, %v1385_v13  ;;  %v2013_v29 = vpack.c.bf16 %v1450_v23, %v1448_v21  ;;  %v1398_v23 = vld [vmem:[%s2967_s9 + $0x190] sm:$0xff] }
 0x392   : > { %v1837_v37 = vmul.f32 -1.442695, %v1187_v31  ;;  %v1926_v39 = vpop.f32.mrb[10].mxu1  ;;  %v1386_v31 = vld [vmem:[%s2967_s9 + $0x130] sm:$0xff] }
 0x393   : > { %2136 = vpow2.f32 %v1838_v35  ;;  %v1202_v44 = vadd.f32 %v1926_v39, %v1074_v33  ;;  %v1196_v46 = vpop.f32.mrb[11].mxu1  ;;  %v2077_v33 = vpack.c.bf16 %v1386_v31, %v1384_v30  ;;  %2076 = vmatprep.subr.bf16.mxu1 %v2075_v27  ;;  %2014 = vmatpush1.bf16.msra.mxu0 %v2013_v29  ;;  %v1453_v35 = vld [vmem:[%s2968_s10 + $0x148] sm:$0xff]  ;;  %v1467_v27 = vld [vmem:[%s2968_s10 + $0x1b8] sm:$0xff] }
 0x394   : > { %2138 = vpow2.f32 %v1837_v37  ;;  %v1197_v48 = vadd.f32 %v1196_v46, %v1073_v36  ;;  %v1455_v36 = vld [vmem:[%s2968_s10 + $0x158] sm:$0xff]  ;;  %v1389_v37 = vld [vmem:[%s2967_s9 + $0x148] sm:$0xff] }
 0x395   : > { %v1840_v40 = vmul.f32 -1.442695, %v1202_v44  ;;  %2140 = vpow2.f32 %v1834_v1  ;;  %2078 = vmatpush1.bf16.msra.mxu1 %v2077_v33  ;;  %v2015_v1 = vpack.c.bf16 %v1455_v36, %v1453_v35  ;;  %v1454_v44 = vld [vmem:[%s2968_s10 + $0x150] sm:$0xff]  ;;  %v2079_v46 = vpack.c.bf16 %v1391_v42, %v1389_v37  ;;  %v1401_v29 = vld [vmem:[%s2967_s9 + $0x1a8] sm:$0xff]  ;;  %v1403_v31 = vld [vmem:[%s2967_s9 + $0x1b8] sm:$0xff] }
 0x396   : > { %v1839_v50 = vmul.f32 -1.442695, %v1197_v48  ;;  %v2017_v48 = vpack.c.bf16 %v1454_v44, %v1452_v43  ;;  %v1464_v33 = vld [vmem:[%s2968_s10 + $0x1a0] sm:$0xff]  ;;  %v1466_v35 = vld [vmem:[%s2968_s10 + $0x1b0] sm:$0xff]  ;;  %v2091_v37 = vpack.c.bf16 %v1403_v31, %v1401_v29  ;;  %v1469_v44 = vld [vmem:[%s2968_s10 + $0x1c8] sm:$0xff] }
 0x397   : > { %2142 = vpow2.f32 %v1840_v40  ;;  %v1388_v40 = vld [vmem:[%s2967_s9 + $0x140] sm:$0xff]  ;;  %2016 = vmatprep.subr.bf16.mxu0 %v2015_v1  ;;  %2080 = vmatprep.subr.bf16.mxu1 %v2079_v46  ;;  %v1402_v42 = vld [vmem:[%s2967_s9 + $0x1b0] sm:$0xff]  ;;  %v1471_v46 = vld [vmem:[%s2968_s10 + $0x1d8] sm:$0xff] }
 0x398   : > { %2144 = vpow2.f32 %v1839_v50  ;;  %2018 = vmatpush1.bf16.msra.mxu0 %v2017_v48  ;;  %v1400_v1 = vld [vmem:[%s2967_s9 + $0x1a0] sm:$0xff]  ;;  %v1405_v48 = vld [vmem:[%s2967_s9 + $0x1c8] sm:$0xff] }
 0x399   : > { %2146 = vpow2.f32 %v1836_v51  ;;  %v2081_v51 = vpack.c.bf16 %v1390_v49, %v1388_v40  ;;  %v2093_v43 = vpack.c.bf16 %v1402_v42, %v1400_v1  ;;  %v2031_v40 = vpack.c.bf16 %v1471_v46, %v1469_v44  ;;  %v1407_v49 = vld [vmem:[%s2967_s9 + $0x1d8] sm:$0xff] }
 0x39a   : > { %2148 = vpow2.f32 %v1833_v53  ;;  %v1457_v53 = vld [vmem:[%s2968_s10 + $0x168] sm:$0xff] }
 0x39b   : > { %2082 = vmatpush1.bf16.msra.mxu1 %v2081_v51  ;;  %v1470_v51 = vld [vmem:[%s2968_s10 + $0x1d0] sm:$0xff] }
 0x39d   : > { %v2137_v55 = vpop.eup %2136 }
 0x39e   : > { %v2139_v56 = vpop.eup %2138  ;;  %v1234_v58 = vadd.f32 1.0, %v2137_v55  ;;  %v1393_v55 = vld [vmem:[%s2967_s9 + $0x168] sm:$0xff] }
 0x39f   : > { %v1233_v59 = vadd.f32 1.0, %v2139_v56  ;;  %v2141_v60 = vpop.eup %2140  ;;  %v2019_v56 = vpack.c.bf16 %v1459_v54, %v1457_v53  ;;  %v1404_v54 = vld [vmem:[%s2967_s9 + $0x1c0] sm:$0xff] }
 0x3a0   : > { %2150 = vrcp.f32 %v1234_v58  ;;  %v1230_v63 = vadd.f32 1.0, %v2141_v60  ;;  %v1456_v58 = vld [vmem:[%s2968_s10 + $0x160] sm:$0xff] }
 0x3a1   : > { %2152 = vrcp.f32 %v1233_v59  ;;  %v2143_v61 = vpop.eup %2142  ;;  %v1458_v59 = vld [vmem:[%s2968_s10 + $0x170] sm:$0xff]  ;;  %2020 = vmatprep.subr.bf16.mxu0 %v2019_v56 }
 0x3a2   : > { %2154 = vpow2.f32 %v1835_v57  ;;  %v2145_v62 = vpop.eup %2144  ;;  %v1236_v5 = vadd.f32 1.0, %v2143_v61  ;;  %v1395_v57 = vld [vmem:[%s2967_s9 + $0x178] sm:$0xff]  ;;  %v2021_v61 = vpack.c.bf16 %v1458_v59, %v1456_v58  ;;  %v1409_v59 = vld [vmem:[%s2967_s9 + $0x1e8] sm:$0xff] }
 0x3a3   : > { %v2147_v0 = vpop.eup %2146  ;;  %v1235_v3 = vadd.f32 1.0, %v2145_v62  ;;  %v2083_v60 = vpack.c.bf16 %v1395_v57, %v1393_v55  ;;  %v1392_v62 = vld [vmem:[%s2967_s9 + $0x160] sm:$0xff]  ;;  %v1406_v55 = vld [vmem:[%s2967_s9 + $0x1d0] sm:$0xff]  ;;  %v1473_v57 = vld [vmem:[%s2968_s10 + $0x1e8] sm:$0xff] }
 0x3a4   : > { %v2149_v6 = vpop.eup %2148  ;;  %v1232_v7 = vadd.f32 1.0, %v2147_v0  ;;  %2022 = vmatpush1.bf16.msra.mxu0 %v2021_v61  ;;  %v2097_v56 = vpack.c.bf16 %v1406_v55, %v1404_v54  ;;  %v1475_v58 = vld [vmem:[%s2968_s10 + $0x1f8] sm:$0xff] }
 0x3a5   : > { %2156 = vrcp.f32 %v1235_v3  ;;  %v1229_v17 = vadd.f32 1.0, %v2149_v6  ;;  %2084 = vmatprep.subr.bf16.mxu1 %v2083_v60  ;;  %v1461_v6 = vld [vmem:[%s2968_s10 + $0x188] sm:$0xff]  ;;  %v2035_v60 = vpack.c.bf16 %v1475_v58, %v1473_v57  ;;  %v1411_v61 = vld [vmem:[%s2967_s9 + $0x1f8] sm:$0xff] }
 0x3a6   : > { %2158 = vrcp.f32 %v1230_v63  ;;  %v1394_v63 = vld [vmem:[%s2967_s9 + $0x170] sm:$0xff] }
 0x3a7   : > { %2160 = vrcp.f32 %v1236_v5  ;;  %v2085_v3 = vpack.c.bf16 %v1394_v63, %v1392_v62  ;;  %v1472_v62 = vld [vmem:[%s2968_s10 + $0x1e0] sm:$0xff]  ;;  %v1474_v63 = vld [vmem:[%s2968_s10 + $0x1f0] sm:$0xff] }
 0x3a8   : > { %2162 = vrcp.f32 %v1232_v7  ;;  %v1463_v7 = vld [vmem:[%s2968_s10 + $0x198] sm:$0xff] }
 0x3a9   : > { %2164 = vrcp.f32 %v1229_v17  ;;  %v2023_v10 = vpack.c.bf16 %v1463_v7, %v1461_v6  ;;  %2086 = vmatpush1.bf16.msra.mxu1 %v2085_v3  ;;  %v1462_v17 = vld [vmem:[%s2968_s10 + $0x190] sm:$0xff]  ;;  %v2037_v3 = vpack.c.bf16 %v1474_v63, %v1472_v62  ;;  %v1624_v63 = vlaneseq }
 0x3aa   : > { %v2151_v9 = vpop.eup %2150  ;;  %v1410_v6 = vld [vmem:[%s2967_s9 + $0x1f0] sm:$0xff] }
 0x3ab   : > { %v2153_v15 = vpop.eup %2152  ;;  %1280 = vperm.xlu0 %2134, %v2151_v9   ;;  %v1397_v9 = vld [vmem:[%s2967_s9 + $0x188] sm:$0xff]  ;;  %2024 = vmatprep.subr.bf16.mxu0 %v2023_v10  ;;  %vm1694_vm4 = vcmp.lt.s32.totalorder %v1624_v63, 256 }
 0x3ac   : > { %v2155_v24 = vpop.eup %2154  ;;  %1275 = vperm.xlu1 %2135, %v2153_v15   ;;  %v2087_v13 = vpack.c.bf16 %v1399_v12, %v1397_v9  ;;  %v1460_v15 = vld [vmem:[%s2968_s10 + $0x180] sm:$0xff] }
 0x3ad   : > { %v1231_v39 = vadd.f32 1.0, %v2155_v24  ;;  %v2025_v21 = vpack.c.bf16 %v1462_v17, %v1460_v15  ;;  %v2089_v24 = vpack.c.bf16 %v1398_v23, %v1396_v18 }
 0x3ae   : > { %2088 = vmatprep.subr.bf16.mxu1 %v2087_v13 }
 0x3af   : > { %1621 = vperm.xlu0 %2134, %v1618_v25   ;;  %v2157_v50 = vpop.eup %2156  ;;  %2166 = vrcp.f32 %v1231_v39  ;;  %2026 = vmatpush1.bf16.msra.mxu0 %v2025_v21  ;;  %v1465_v25 = vld [vmem:[%s2968_s10 + $0x1a8] sm:$0xff]  ;;  %v2029_v39 = vpack.c.bf16 %v1466_v35, %v1464_v33 }
 0x3b0   : > { %v2159_v52 = vpop.eup %2158  ;;  %1285 = vperm.xlu1 %2135, %v2157_v50   ;;  %2090 = vmatpush1.bf16.msra.mxu1 %v2089_v24  ;;  %v2027_v30 = vpack.c.bf16 %v1467_v27, %v1465_v25  ;;  %v1468_v50 = vld [vmem:[%s2968_s10 + $0x1c0] sm:$0xff] }
 0x3b1   : > { %v2161_v0 = vpop.eup %2160  ;;  %2092 = vmatprep.subr.bf16.mxu1 %v2091_v37  ;;  %v2033_v53 = vpack.c.bf16 %v1470_v51, %v1468_v50 }
 0x3b2   : > { %v2163_v5 = vpop.eup %2162  ;;  %2028 = vmatprep.subr.bf16.mxu0 %v2027_v30 }
 0x3b3   : > { %1260 = vperm.xlu0 %2134, %v2159_v52   ;;  %v2165_v19 = vpop.eup %2164  ;;  %2030 = vmatpush1.bf16.msra.mxu0 %v2029_v39  ;;  %v2095_v52 = vpack.c.bf16 %v1407_v49, %v1405_v48 }
 0x3b4   : > { %1290 = vperm.xlu1 %2135, %v2161_v0   ;;  %2094 = vmatpush1.bf16.msra.mxu1 %v2093_v43  ;;  %v2099_v0 = vpack.c.bf16 %v1411_v61, %v1409_v59 }
 0x3b5   : > { %2032 = vmatprep.subr.bf16.mxu0 %v2031_v40  ;;  %2096 = vmatprep.subr.bf16.mxu1 %v2095_v52 }
 0x3b7   : > { %1270 = vperm.xlu0 %2134, %v2163_v5   ;;  %2034 = vmatpush1.bf16.msra.mxu0 %v2033_v53  ;;  %v1408_v5 = vld [vmem:[%s2967_s9 + $0x1e0] sm:$0xff] }
 0x3b8   : > { %1255 = vperm.xlu1 %2135, %v2165_v19   ;;  %2098 = vmatpush1.bf16.msra.mxu1 %v2097_v56  ;;  %v2101_v7 = vpack.c.bf16 %v1410_v6, %v1408_v5 }
 0x3b9   : > { %v2167_v36 = vpop.eup %2166  ;;  %2036 = vmatprep.subr.bf16.mxu0 %v2035_v60  ;;  %2100 = vmatprep.subr.bf16.mxu1 %v2099_v0  ;;  %v1625_v0 = vshrl.u32 %v1624_v63, 7 }
 0x3bb   : > { %2038 = vmatpush1.bf16.msra.mxu0 %v2037_v3  ;;  %v1626_v3 = vsub.s32 0, %v1625_v0 }
 0x3bc   : > { %1265 = vperm.xlu1 %2135, %v2167_v36   ;;  %2102 = vmatpush1.bf16.msra.mxu1 %v2101_v7 }
 0x42a   : > { %v1281_v10 = vpop.permute.xlu0 %1280 }
 0x42b   : > { %v1276_v9 = vpop.permute.xlu1 %1275  ;;  %v1303_v12 = vmul.f32 %v1281_v10, %v2434_v32  ;;  %v1304_v13 = vmul.f32 %v1281_v10, %v2436_v34 }
 0x42c   : > { %v1301_v15 = vmul.f32 %v1276_v9, %v2428_v26  ;;  %v1302_v17 = vmul.f32 %v1276_v9, %v2430_v28 }
 0x42e   : > { %v1327_v23 = vadd.f32 %v1303_v12, %v1301_v15  ;;  %v1336_v24 = vadd.f32 %v1304_v13, %v1302_v17  ;;  %v1622_v5 = vpop.permute.xlu0 %1621 }
 0x42f   : > { %v1286_v18 = vpop.permute.xlu1 %1285  ;;  %v1627_v9 = vrot.slane %v1622_v5, %v1626_v3 }
 0x430   : > { %v1305_v19 = vmul.f32 %v1286_v18, %v2440_v38  ;;  %v1306_v21 = vmul.f32 %v1286_v18, %v2443_v41 }
 0x432   : > { %v1328_v27 = vadd.f32 %v1327_v23, %v1305_v19  ;;  %v1337_v29 = vadd.f32 %v1336_v24, %v1306_v21  ;;  %v1309_v31 = vmax.f32 %v1301_v15, %v1305_v19  ;;  %v1318_v34 = vmax.f32 %v1302_v17, %v1306_v21 }
 0x433   : > { %v1291_v25 = vpop.permute.xlu1 %1290 }
 0x434   : > { %v1307_v30 = vmul.f32 %v1291_v25, %v2447_v45  ;;  %v1308_v32 = vmul.f32 %v1291_v25, %v2449_v47 }
 0x436   : > { %v1310_v33 = vmax.f32 %v1303_v12, %v1307_v30  ;;  %v1319_v26 = vmax.f32 %v1304_v13, %v1308_v32  ;;  %v1329_v35 = vadd.f32 %v1328_v27, %v1307_v30  ;;  %v1338_v28 = vadd.f32 %v1337_v29, %v1308_v32  ;;  %v1261_v29 = vpop.permute.xlu0 %1260 }
 0x437   : > { %v2188_v30 = vmov 1966171168  }
 0x438   : > { %v1311_v36 = vmax.f32 %v1309_v31, %v1310_v33  ;;  %v1320_v37 = vmax.f32 %v1318_v34, %v1319_v26  ;;  %v1330_v38 = vrot.slane %v1329_v35, 4  ;;  %v1339_v39 = vrot.slane %v1338_v28, 4  ;;  %v1256_v31 = vpop.permute.xlu1 %1255 }
 0x439   : > { %v1678_v32 = vunpack.c.l.s4 %v2188_v30 }
 0x43a   : > { %v1312_v41 = vrot.slane %v1311_v36, 4  ;;  %v1321_v1 = vrot.slane %v1320_v37, 4  ;;  %v1331_v42 = vadd.f32 %v1330_v38, %v1329_v35  ;;  %v1340_v43 = vadd.f32 %v1339_v39, %v1338_v28  ;;  %v1271_v33 = vpop.permute.xlu0 %1270 }
 0x43b   : > { %v1679_v34 = vunpack.c.0.s8 %v1678_v32  ;;  %v1299_v38 = vmul.f32 %v1271_v33, %v2422_v20 }
 0x43c   : > { %v1313_v44 = vmax.f32 %v1311_v36, %v1312_v41  ;;  %v1322_v46 = vmax.f32 %v1320_v37, %v1321_v1  ;;  %v1332_v48 = vrot.slane %v1331_v42, 2  ;;  %v1341_v45 = vrot.slane %v1340_v43, 2  ;;  %v1266_v26 = vpop.permute.xlu1 %1265 }
 0x43d   : > { %v1682_v28 = vsub.s32 %v1679_v34, %v1625_v0  ;;  %v1295_v36 = vmul.f32 %v1261_v29, %v2410_v8  ;;  %v1296_v37 = vmul.f32 %v1261_v29, %v2412_v11  ;;  %v1300_v41 = vmul.f32 %v1271_v33, %v2424_v22 }
 0x43e   : > { %v1314_v40 = vrot.slane %v1313_v44, 2  ;;  %v1333_v47 = vadd.f32 %v1332_v48, %v1331_v42  ;;  %v1342_v49 = vadd.f32 %v1341_v45, %v1340_v43  ;;  %v1323_v50 = vrot.slane %v1322_v46, 2 }
 0x43f   : > { %v1293_v1 = vmul.f32 %v1256_v31, %v2404_v2  ;;  %v1297_v42 = vmul.f32 %v1266_v26, %v2416_v14 }
 0x440   : > { %v1315_v51 = vmax.f32 %v1313_v44, %v1314_v40  ;;  %v1334_v52 = vrot.slane %v1333_v47, 1  ;;  %v1343_v53 = vrot.slane %v1342_v49, 1  ;;  %v1324_v54 = vmax.f32 %v1322_v46, %v1323_v50 }
 0x441   : > { %v1294_v44 = vmul.f32 %v1256_v31, %v2406_v4  ;;  %v1298_v46 = vmul.f32 %v1266_v26, %v2418_v16 }
 0x442   : > { %v1316_v55 = vrot.slane %v1315_v51, 1  ;;  %v1335_v56 = vadd.f32 %v1334_v52, %v1333_v47  ;;  %v1344_v57 = vadd.f32 %v1343_v53, %v1342_v49  ;;  %v1325_v58 = vrot.slane %v1324_v54, 1 }
 0x444   : > { %v1317_v59 = vmax.f32 %v1315_v51, %v1316_v55  ;;  %v1346_v60 = vmul.f32 0.03125, %v1335_v56  ;;  %v1347_v61 = vmul.f32 0.03125, %v1344_v57  ;;  %v1326_v62 = vmax.f32 %v1324_v54, %v1325_v58 }
 0x446   : > { %1540 = vmatprep.mubr.f32.mxu0 %v1347_v61  ;;  %1611 = vmatprep.mubr.f32.mxu1 %v1326_v62 }
 0x447   : > { %1541 = vmatmul.mubr.f32.vlgmr.msra.gmra.mrb[16].mxu0 %v1346_v60  ;;  %1612 = vmatmul.mubr.f32.vlgmr.msra.gmra.mrb[12].mxu1 %v1317_v59 }
 0x51a   : > { %v1542_v6 = vpop.f32.mrb[16].mxu0  ;;  %v1613_v7 = vpop.f32.mrb[12].mxu1 }
 0x51b   : > { %v1614_v10 = vadd.f32 %v1613_v7, %v1542_v6  ;;  %v1544_v12 = vpop.f32.mrb[17].mxu0  ;;  %v1615_v13 = vpop.f32.mrb[13].mxu1 }
 0x51c   : > { %v1616_v15 = vadd.f32 %v1615_v13, %v1544_v12 }
 0x51d   : > { %v1628_v17 = vadd.f32 %v1627_v9, %v1614_v10 }
 0x51e   : > { %v1629_v18 = vadd.f32 %v1627_v9, %v1616_v15 }
 0x51f   : > { %v1841_v19 = vmul.f32 -1.442695, %v1628_v17 }
 0x520   : > { %v1842_v21 = vmul.f32 -1.442695, %v1629_v18 }
 0x521   : > { %2168 = vpow2.f32 %v1841_v19 }
 0x522   : > { %2170 = vpow2.f32 %v1842_v21 }
 0x52b   : > { %v2169_v23 = vpop.eup %2168 }
 0x52c   : > { %v2171_v24 = vpop.eup %2170  ;;  %v1636_v25 = vadd.f32 1.0, %v2169_v23 }
 0x52d   : > { %v1637_v27 = vadd.f32 1.0, %v2171_v24 }
 0x52e   : > { %2172 = vrcp.f32 %v1636_v25 }
 0x52f   : > { %2174 = vrcp.f32 %v1637_v27 }
 0x538   : > { %v2173_v35 = vpop.eup %2172 }
 0x539   : > { %v2175_v39 = vpop.eup %2174  ;;  %v1645_v43 = vrot.slane %v2173_v35, %v1626_v3 }
 0x53a   : > { %v1649_v48 = vrot.slane %v2175_v39, %v1626_v3  ;;  %v1676_v8 = vcombine.low %v2173_v35, %v2175_v39 }
 0x53b   : > { %v1650_v45 = vmul.f32 %v1645_v43, %v1293_v1  ;;  %v1652_v40 = vmul.f32 %v1645_v43, %v1295_v36  ;;  %v1654_v11 = vmul.f32 %v1645_v43, %v1297_v42  ;;  %v1656_v47 = vmul.f32 %v1645_v43, %v1299_v38 }
 0x53c   : > { %v1651_v2 = vmul.f32 %v1649_v48, %v1294_v44  ;;  %v1653_v20 = vmul.f32 %v1649_v48, %v1296_v37  ;;  %v1655_v22 = vmul.f32 %v1649_v48, %v1298_v46  ;;  %v1657_v14 = vmul.f32 %v1649_v48, %v1300_v41 }
 0x53d   : > { %v1658_v49 = vadd.f32 %v1650_v45, %v1293_v1  ;;  %v1660_v4 = vadd.f32 %v1652_v40, %v1295_v36  ;;  %v1662_v50 = vadd.f32 %v1654_v11, %v1297_v42  ;;  %v1664_v16 = vadd.f32 %v1656_v47, %v1299_v38 }
 0x53e   : > { %v1659_v51 = vadd.f32 %v1651_v2, %v1294_v44  ;;  %v1661_v52 = vadd.f32 %v1653_v20, %v1296_v37  ;;  %v1663_v53 = vadd.f32 %v1655_v22, %v1298_v46  ;;  %v1665_v54 = vadd.f32 %v1657_v14, %v1300_v41 }
 0x53f   : > { %1666 = vst [vmem:[%s469_s17] sm:$0xff] %v1658_v49  ;;  %1668 = vst [vmem:[%s469_s17 + $0x10] sm:$0xff] %v1660_v4  ;;  %v1683_v55 = vrot.slane %v1676_v8, %v1682_v28 }
 0x540   : > { %1670 = vst [vmem:[%s469_s17 + $0x20] sm:$0xff] %v1662_v50  ;;  %1672 = vst [vmem:[%s469_s17 + $0x30] sm:$0xff] %v1664_v16 }
 0x541   : > { %1667 = vst [vmem:[%s469_s17 + $0x8] sm:$0xff] %v1659_v51  ;;  %1669 = vst [vmem:[%s469_s17 + $0x18] sm:$0xff] %v1661_v52  ;;  %v1690_v56 = vrot.slane %v1683_v55, %v1682_v28 }
 0x542   : > { %1671 = vst [vmem:[%s469_s17 + $0x28] sm:$0xff] %v1663_v53  ;;  %1673 = vst [vmem:[%s469_s17 + $0x38] sm:$0xff] %v1665_v54 }
 0x543   : > { %1696 = vst.msk [vmem:[%s473_s20] sm:$0x3] %vm1694_vm4, %v1690_v56 }
 0x544 PF: > { %s26_s27 = sadd.s32 1, %s2182_s27  }
 0x545   : > { %p23_p4 = scmp.ge.s32.totalorder %s26_s27, 4  }
 0x547   :  { %25 = sbr.rel (!%p23_p4) target bundleno = 3 (0x3), region = 113 }

</bundles_post_ra>
